<compile_context>
chip_gen: v7x
topology: tpu7x:2x2x1
jax: 0.10.0
libtpu: 0.0.40
codegen_flags: <defaults>
</compile_context>

<pallas_src>
import functools
import math

import jax
import jax.numpy as jnp
from jax.experimental import pallas as pl
from jax.experimental.pallas import tpu as pltpu


# --------------------------------- fused kernel ----------------------------------
def _lstm_cell(gates, c_prev, H):
    """PyTorch gate order [i f g o]; full-lane-width nonlinearities, then slices."""
    sig = jax.nn.sigmoid(gates)
    tg = jnp.tanh(gates)
    i = sig[:, 0 * H:1 * H]
    f = sig[:, 1 * H:2 * H]
    g = tg[:, 2 * H:3 * H]
    o = sig[:, 3 * H:4 * H]
    c = f * c_prev + i * g
    h = o * jnp.tanh(c)
    return h, c


def bilstm_fc_kernel(*refs, num_layers, seq_len, batch, hidden):
    """refs = [x2, (w_ih_l, b_l, w_rec_l) * num_layers, fc_w_t, fc_b, out].

    x2:      (T*Bp, D0) bf16   time-major rows (row = t*Bp + b), batch padded to Bp
    w_ih_l:  (2, D_l, 4H) bf16 [fwd, bwd], pre-transposed, gate order [i f g o]
    b_l:     (2, 1, 4H) f32    b_ih + b_hh per direction
    w_rec_l: layers < L-1: (2H, 8H) bf16 gate-interleaved block-diag [h_f|h_b] weight
             layer  L-1  : (H, 4H)  bf16 forward-only recurrent weight
    fc_w_t:  (2H, O) f32, fc_b: (1, O) f32
    out:     (Bp, O) f32
    """
    T, Bp, H = seq_len, batch, hidden
    x_ref = refs[0]
    layer_refs = refs[1:1 + 3 * num_layers]
    fc_w_ref = refs[1 + 3 * num_layers]
    fc_b_ref = refs[2 + 3 * num_layers]
    out_ref = refs[3 + 3 * num_layers]

    x2 = x_ref[...]                                   # (T*Bp, D) bf16, VMEM-resident

    # ---------------- layers 0 .. L-2: fused fwd+bwd block-diag recurrence --------
    for l in range(num_layers - 1):
        w_ih_ref, b_ref, w_blk_ref = layer_refs[3 * l:3 * l + 3]
        w_ih_f = w_ih_ref[0]                          # (D, 4H) bf16
        w_ih_b = w_ih_ref[1]
        b_f = b_ref[0]                                # (1, 4H) f32
        b_b = b_ref[1]
        w_blk = w_blk_ref[...]                        # (2H, 8H) bf16

        # Hoisted input projections (off the serial chain), bias folded in.
        px_f = jnp.dot(x2, w_ih_f, preferred_element_type=jnp.float32) + b_f
        px_b = jnp.dot(x2, w_ih_b, preferred_element_type=jnp.float32) + b_b

        # Time-reverse the backward projection (static 8-row block slices) and
        # lane-interleave per gate -> P[t] columns [i_f i_b f_f f_b g_f g_b o_f o_b].
        px_b_rev = jnp.concatenate(
            [px_b[(T - 1 - t) * Bp:(T - t) * Bp, :] for t in range(T)], axis=0)
        parts = []
        for k in range(4):
            parts.append(px_f[:, k * H:(k + 1) * H])
            parts.append(px_b_rev[:, k * H:(k + 1) * H])
        P = jnp.concatenate(parts, axis=-1)           # (T*Bp, 8H) f32

        h = jnp.zeros((Bp, 2 * H), jnp.float32)       # fused [h_f | h_b]
        c = jnp.zeros((Bp, 2 * H), jnp.float32)
        hs = [None] * T
        for t in range(T):                            # static unroll (T small)
            rec = jnp.dot(h.astype(jnp.bfloat16), w_blk,
                          preferred_element_type=jnp.float32)   # (Bp, 8H)
            g_all = P[t * Bp:(t + 1) * Bp, :] + rec
            sig = jax.nn.sigmoid(g_all)
            tg = jnp.tanh(g_all)
            i_ = sig[:, 0 * H:2 * H]
            f_ = sig[:, 2 * H:4 * H]
            g_ = tg[:, 4 * H:6 * H]
            o_ = sig[:, 6 * H:8 * H]
            c = f_ * c + i_ * g_
            h = o_ * jnp.tanh(c)
            hs[t] = h                                 # = [h_f(t) | h_b(T-1-t)]

        # Next layer's time-major input: row t = [h_f(t) | h_b(t)].
        hf_all = jnp.concatenate([hs[t][:, :H] for t in range(T)], axis=0)
        hb_all = jnp.concatenate([hs[T - 1 - t][:, H:] for t in range(T)], axis=0)
        x2 = jnp.concatenate([hf_all, hb_all], axis=-1).astype(jnp.bfloat16)

    # ---------------- last layer: forward recurrence + single backward cell -------
    li = num_layers - 1
    w_ih_ref, b_ref, w_hh_f_ref = layer_refs[3 * li:3 * li + 3]
    w_ih_f = w_ih_ref[0]                              # (D_last, 4H) bf16
    w_ih_b = w_ih_ref[1]
    b_f = b_ref[0]
    b_b = b_ref[1]
    w_hh_f = w_hh_f_ref[...]                          # (H, 4H) bf16

    px_f = jnp.dot(x2, w_ih_f, preferred_element_type=jnp.float32) + b_f
    h_f = jnp.zeros((Bp, H), jnp.float32)
    c_f = jnp.zeros((Bp, H), jnp.float32)
    for t in range(T):
        g_f = px_f[t * Bp:(t + 1) * Bp, :] + jnp.dot(
            h_f.astype(jnp.bfloat16), w_hh_f, preferred_element_type=jnp.float32)
        h_f, c_f = _lstm_cell(g_f, c_f, H)

    # Backward direction: only its first step (time t = T-1) is used by the model.
    # With h_prev = c_prev = 0 there is no recurrent matmul; the other T-1 backward
    # steps are skipped explicitly (previously left to compiler DCE).
    g_b = jnp.dot(x2[(T - 1) * Bp:T * Bp, :], w_ih_b,
                  preferred_element_type=jnp.float32) + b_b
    h_b, _ = _lstm_cell(g_b, jnp.zeros((Bp, H), jnp.float32), H)

    # out[:, -1, :] of the bidirectional LSTM, then fused Linear head (f32).
    last = jnp.concatenate([h_f, h_b], axis=-1)       # (Bp, 2H)
    out_ref[...] = (
        jnp.dot(last, fc_w_ref[...], preferred_element_type=jnp.float32)
        + fc_b_ref[...]
    ).astype(out_ref.dtype)


# ----------------------------------- wrapper --------------------------------------
def model_forward(kparams, x_bsf):
    """x_bsf: (batch, seq, input_dim) -> (batch, 1, output_dim)."""
    B, T, D = x_bsf.shape
    L = len(kparams["layers"])
    H = kparams["layers"][0][0].shape[2] // 4         # w_ih: (2, D, 4H)
    O = kparams["fc_w_t"].shape[1]

    # Pad batch to one full sublane tile so every 8-row block slice is aligned.
    SUB = 8
    Bp = max(SUB, ((B + SUB - 1) // SUB) * SUB)
    x_pad = x_bsf if Bp == B else jnp.pad(x_bsf, ((0, Bp - B), (0, 0), (0, 0)))

    # Time-major, flattened to (T*Bp, D): row = t*Bp + b, stored bf16.
    x2 = jnp.transpose(x_pad, (1, 0, 2)).reshape(T * Bp, D).astype(jnp.bfloat16)

    flat_w = []
    for (w_ih, b, w_rec) in kparams["layers"]:
        flat_w += [w_ih, b, w_rec]

    n_in = 1 + 3 * L + 2
    kernel = functools.partial(
        bilstm_fc_kernel, num_layers=L, seq_len=T, batch=Bp, hidden=H)

    out = pl.pallas_call(
        kernel,
        out_shape=jax.ShapeDtypeStruct((Bp, O), jnp.float32),
        in_specs=[pl.BlockSpec(memory_space=pltpu.MemorySpace.VMEM)
                  for _ in range(n_in)],
        out_specs=pl.BlockSpec(memory_space=pltpu.MemorySpace.VMEM),
    )(x2, *flat_w, kparams["fc_w_t"], kparams["fc_b"])

    return out[:B, None, :]                           # slice padding, unsqueeze(1)


# ----------------------------------- params ---------------------------------------
def init_params(key, input_dim, hidden_dim, layer_dim, output_dim):
    """PyTorch-layout parameters (w_ih: (4H, in), w_hh: (4H, H), separate biases)."""
    H = hidden_dim
    stdv = 1.0 / math.sqrt(H)
    params = {"layers": []}
    for l in range(layer_dim):
        in_size = input_dim if l == 0 else 2 * H
        layer = {}
        for tag in ("fwd", "bwd"):
            key, k1, k2, k3, k4 = jax.random.split(key, 5)
            w_ih = jax.random.uniform(k1, (4 * H, in_size), jnp.float32, -stdv, stdv)
            w_hh = jax.random.uniform(k2, (4 * H, H), jnp.float32, -stdv, stdv)
            b_ih = jax.random.uniform(k3, (4 * H,), jnp.float32, -stdv, stdv)
            b_hh = jax.random.uniform(k4, (4 * H,), jnp.float32, -stdv, stdv)
            layer[tag] = (w_ih, w_hh, b_ih, b_hh)
        params["layers"].append(layer)
    key, k1, k2 = jax.random.split(key, 3)
    stdv_fc = 1.0 / math.sqrt(2 * H)
    params["fc_w"] = jax.random.uniform(k1, (output_dim, 2 * H), jnp.float32,
                                        -stdv_fc, stdv_fc)
    params["fc_b"] = jax.random.uniform(k2, (output_dim,), jnp.float32,
                                        -stdv_fc, stdv_fc)
    return params


def prepare_params(params, hidden_dim):
    """One-time layout prep: transpose, stack fwd/bwd, fold biases, bf16 weights,
    and build the gate-interleaved block-diagonal recurrent weight for fused layers."""
    H = hidden_dim
    L = len(params["layers"])
    kp = {"layers": []}
    for idx, layer in enumerate(params["layers"]):
        w_ih_f, w_hh_f, b_ih_f, b_hh_f = layer["fwd"]
        w_ih_b, w_hh_b, b_ih_b, b_hh_b = layer["bwd"]
        w_ih = jnp.stack([w_ih_f.T, w_ih_b.T]).astype(jnp.bfloat16)      # (2, D, 4H)
        b = jnp.stack([
            (b_ih_f + b_hh_f).reshape(1, 4 * H),
            (b_ih_b + b_hh_b).reshape(1, 4 * H),
        ]).astype(jnp.float32)                                           # (2, 1, 4H)
        if idx < L - 1:
            # Gate-interleaved block-diagonal [h_f|h_b] weight: (2H, 8H), columns
            # ordered [i_f i_b | f_f f_b | g_f g_b | o_f o_b].
            whh_f_t = w_hh_f.T                                           # (H, 4H)
            whh_b_t = w_hh_b.T
            z = jnp.zeros((H, H), jnp.float32)
            cols = []
            for k in range(4):
                top = jnp.concatenate([whh_f_t[:, k * H:(k + 1) * H], z], axis=1)
                bot = jnp.concatenate([z, whh_b_t[:, k * H:(k + 1) * H]], axis=1)
                cols.append(jnp.concatenate([top, bot], axis=0))         # (2H, 2H)
            w_rec = jnp.concatenate(cols, axis=1).astype(jnp.bfloat16)   # (2H, 8H)
        else:
            # Last layer: forward-only recurrent weight (backward needs none).
            w_rec = w_hh_f.T.astype(jnp.bfloat16)                        # (H, 4H)
        kp["layers"].append((w_ih, b, w_rec))
    kp["fc_w_t"] = params["fc_w"].T.astype(jnp.float32)                  # (2H, O)
    kp["fc_b"] = params["fc_b"].reshape(1, -1).astype(jnp.float32)       # (1, O)
    return kp


# ----------------------------- pure-JAX reference check ---------------------------
def _ref_lstm_direction(x_tbf, w_ih, w_hh, b_ih, b_hh, reverse):
    T, B, _ = x_tbf.shape
    H = w_hh.shape[1]
    order = range(T - 1, -1, -1) if reverse else range(T)
    h = jnp.zeros((B, H), jnp.float32)
    c = jnp.zeros((B, H), jnp.float32)
    b = (b_ih + b_hh)[None, :]
    outs = [None] * T
    for t in order:
        gates = x_tbf[t] @ w_ih.T + h @ w_hh.T + b
        i = jax.nn.sigmoid(gates[:, 0 * H:1 * H])
        f = jax.nn.sigmoid(gates[:, 1 * H:2 * H])
        g = jnp.tanh(gates[:, 2 * H:3 * H])
        o = jax.nn.sigmoid(gates[:, 3 * H:4 * H])
        c = f * c + i * g
        h = o * jnp.tanh(c)
        outs[t] = h
    return jnp.stack(outs, axis=0)


def ref_forward(params, x_bsf):
    x = jnp.transpose(x_bsf, (1, 0, 2)).astype(jnp.float32)
    inp = x
    for layer in params["layers"]:
        hs_f = _ref_lstm_direction(inp, *layer["fwd"], reverse=False)
        hs_b = _ref_lstm_direction(inp, *layer["bwd"], reverse=True)
        inp = jnp.concatenate([hs_f, hs_b], axis=-1)
    last = inp[-1]
    out = last @ params["fc_w"].T + params["fc_b"][None, :]
    return out[:, None, :]


# ------------------------------------ main ----------------------------------------
if __name__ == "__main__":
    # cfg: input_dim=16, hidden_dim=32, layer_dim=2, output_dim=4
    INPUT_DIM, HIDDEN_DIM, LAYER_DIM, OUTPUT_DIM = 16, 32, 2, 4
    BATCH, SEQ = 2, 8

    key = jax.random.PRNGKey(0)
    key, xkey, pkey = jax.random.split(key, 3)
    x = jax.random.normal(xkey, (BATCH, SEQ, INPUT_DIM), jnp.float32)
    params = init_params(pkey, INPUT_DIM, HIDDEN_DIM, LAYER_DIM, OUTPUT_DIM)
    kparams = prepare_params(params, HIDDEN_DIM)

    fwd = jax.jit(model_forward)
    out = jax.block_until_ready(fwd(kparams, x))
    assert out.shape == (BATCH, 1, OUTPUT_DIM), out.shape

    ref = jax.block_until_ready(ref_forward(params, x))
    max_err = float(jnp.max(jnp.abs(out - ref)))
    # bf16 MXU operands through the recurrence -> loosened tolerance vs. f32 ref.
    assert jnp.allclose(out, ref, atol=5e-2, rtol=5e-2), max_err

    print("KERNEL_OK")
</pallas_src>

<mosaic_0001>
module attributes {stable_mosaic.version = 11 : i64} {
  func.func @bilstm_fc_kernel(%arg0: memref<64x16xbf16, #tpu.memory_space<vmem>>, %arg1: memref<2x16x128xbf16, #tpu.memory_space<vmem>>, %arg2: memref<2x1x128xf32, #tpu.memory_space<vmem>>, %arg3: memref<64x256xbf16, #tpu.memory_space<vmem>>, %arg4: memref<2x64x128xbf16, #tpu.memory_space<vmem>>, %arg5: memref<2x1x128xf32, #tpu.memory_space<vmem>>, %arg6: memref<32x128xbf16, #tpu.memory_space<vmem>>, %arg7: memref<64x4xf32, #tpu.memory_space<vmem>>, %arg8: memref<1x4xf32, #tpu.memory_space<vmem>>, %arg9: memref<8x4xf32, #tpu.memory_space<vmem>>) attributes {dimension_semantics = [], scalar_prefetch = 0 : i64, scratch_operands = 0 : i64, tpu.core_type = #tpu.core_type<tc>} {
    %c0 = arith.constant 0 : index
    %c0_0 = arith.constant 0 : index
    %0 = vector.load %arg0[%c0, %c0_0] : memref<64x16xbf16, #tpu.memory_space<vmem>>, vector<64x16xbf16>
    %c0_1 = arith.constant 0 : index
    %c0_2 = arith.constant 0 : index
    %c0_3 = arith.constant 0 : index
    %1 = vector.load %arg1[%c0_1, %c0_2, %c0_3] : memref<2x16x128xbf16, #tpu.memory_space<vmem>>, vector<1x16x128xbf16>
    %2 = vector.shape_cast %1 : vector<1x16x128xbf16> to vector<16x128xbf16>
    %c1 = arith.constant 1 : index
    %c0_4 = arith.constant 0 : index
    %c0_5 = arith.constant 0 : index
    %3 = vector.load %arg1[%c1, %c0_4, %c0_5] : memref<2x16x128xbf16, #tpu.memory_space<vmem>>, vector<1x16x128xbf16>
    %4 = vector.shape_cast %3 : vector<1x16x128xbf16> to vector<16x128xbf16>
    %c0_6 = arith.constant 0 : index
    %c0_7 = arith.constant 0 : index
    %c0_8 = arith.constant 0 : index
    %5 = vector.load %arg2[%c0_6, %c0_7, %c0_8] : memref<2x1x128xf32, #tpu.memory_space<vmem>>, vector<1x1x128xf32>
    %6 = vector.shape_cast %5 : vector<1x1x128xf32> to vector<1x128xf32>
    %c1_9 = arith.constant 1 : index
    %c0_10 = arith.constant 0 : index
    %c0_11 = arith.constant 0 : index
    %7 = vector.load %arg2[%c1_9, %c0_10, %c0_11] : memref<2x1x128xf32, #tpu.memory_space<vmem>>, vector<1x1x128xf32>
    %8 = vector.shape_cast %7 : vector<1x1x128xf32> to vector<1x128xf32>
    %c0_12 = arith.constant 0 : index
    %c0_13 = arith.constant 0 : index
    %9 = vector.load %arg3[%c0_12, %c0_13] : memref<64x256xbf16, #tpu.memory_space<vmem>>, vector<64x256xbf16>
    %cst = arith.constant dense<0.000000e+00> : vector<64x128xf32>
    %10 = tpu.matmul %0, %2, %cst {dimension_numbers = #tpu.dot_dimension_numbers<[1], [0], [0], [1], [0, 0, 1, 1], [], []>} : vector<64x16xbf16>, vector<16x128xbf16>, vector<64x128xf32> -> vector<64x128xf32>
    %11 = vector.broadcast %6 : vector<1x128xf32> to vector<64x128xf32>
    %12 = arith.addf %10, %11 : vector<64x128xf32>
    %cst_14 = arith.constant dense<0.000000e+00> : vector<64x128xf32>
    %13 = tpu.matmul %0, %4, %cst_14 {dimension_numbers = #tpu.dot_dimension_numbers<[1], [0], [0], [1], [0, 0, 1, 1], [], []>} : vector<64x16xbf16>, vector<16x128xbf16>, vector<64x128xf32> -> vector<64x128xf32>
    %14 = vector.broadcast %8 : vector<1x128xf32> to vector<64x128xf32>
    %15 = arith.addf %13, %14 : vector<64x128xf32>
    %16 = vector.extract_strided_slice %15 {offsets = [56, 0], sizes = [8, 128], strides = [1, 1]} : vector<64x128xf32> to vector<8x128xf32>
    %17 = vector.extract_strided_slice %15 {offsets = [48, 0], sizes = [8, 128], strides = [1, 1]} : vector<64x128xf32> to vector<8x128xf32>
    %18 = vector.extract_strided_slice %15 {offsets = [40, 0], sizes = [8, 128], strides = [1, 1]} : vector<64x128xf32> to vector<8x128xf32>
    %19 = vector.extract_strided_slice %15 {offsets = [32, 0], sizes = [8, 128], strides = [1, 1]} : vector<64x128xf32> to vector<8x128xf32>
    %20 = vector.extract_strided_slice %15 {offsets = [24, 0], sizes = [8, 128], strides = [1, 1]} : vector<64x128xf32> to vector<8x128xf32>
    %21 = vector.extract_strided_slice %15 {offsets = [16, 0], sizes = [8, 128], strides = [1, 1]} : vector<64x128xf32> to vector<8x128xf32>
    %22 = vector.extract_strided_slice %15 {offsets = [8, 0], sizes = [8, 128], strides = [1, 1]} : vector<64x128xf32> to vector<8x128xf32>
    %23 = vector.extract_strided_slice %15 {offsets = [0, 0], sizes = [8, 128], strides = [1, 1]} : vector<64x128xf32> to vector<8x128xf32>
    %24 = tpu.concatenate %16, %17, %18, %19, %20, %21, %22, %23 in 0 : vector<8x128xf32>, vector<8x128xf32>, vector<8x128xf32>, vector<8x128xf32>, vector<8x128xf32>, vector<8x128xf32>, vector<8x128xf32>, vector<8x128xf32> -> vector<64x128xf32>
    %25 = vector.extract_strided_slice %12 {offsets = [0, 0], sizes = [64, 32], strides = [1, 1]} : vector<64x128xf32> to vector<64x32xf32>
    %26 = vector.extract_strided_slice %24 {offsets = [0, 0], sizes = [64, 32], strides = [1, 1]} : vector<64x128xf32> to vector<64x32xf32>
    %27 = vector.extract_strided_slice %12 {offsets = [0, 32], sizes = [64, 32], strides = [1, 1]} : vector<64x128xf32> to vector<64x32xf32>
    %28 = vector.extract_strided_slice %24 {offsets = [0, 32], sizes = [64, 32], strides = [1, 1]} : vector<64x128xf32> to vector<64x32xf32>
    %29 = vector.extract_strided_slice %12 {offsets = [0, 64], sizes = [64, 32], strides = [1, 1]} : vector<64x128xf32> to vector<64x32xf32>
    %30 = vector.extract_strided_slice %24 {offsets = [0, 64], sizes = [64, 32], strides = [1, 1]} : vector<64x128xf32> to vector<64x32xf32>
    %31 = vector.extract_strided_slice %12 {offsets = [0, 96], sizes = [64, 32], strides = [1, 1]} : vector<64x128xf32> to vector<64x32xf32>
    %32 = vector.extract_strided_slice %24 {offsets = [0, 96], sizes = [64, 32], strides = [1, 1]} : vector<64x128xf32> to vector<64x32xf32>
    %33 = tpu.concatenate %25, %26, %27, %28, %29, %30, %31, %32 in 1 : vector<64x32xf32>, vector<64x32xf32>, vector<64x32xf32>, vector<64x32xf32>, vector<64x32xf32>, vector<64x32xf32>, vector<64x32xf32>, vector<64x32xf32> -> vector<64x256xf32>
    %cst_15 = arith.constant 0.000000e+00 : f32
    %34 = vector.broadcast %cst_15 : f32 to vector<8x64xf32>
    %cst_16 = arith.constant 0.000000e+00 : f32
    %35 = vector.broadcast %cst_16 : f32 to vector<8x64xf32>
    %36 = arith.truncf %34 : vector<8x64xf32> to vector<8x64xbf16>
    %cst_17 = arith.constant dense<0.000000e+00> : vector<8x256xf32>
    %37 = tpu.matmul %36, %9, %cst_17 {dimension_numbers = #tpu.dot_dimension_numbers<[1], [0], [0], [1], [0, 0, 1, 1], [], []>} : vector<8x64xbf16>, vector<64x256xbf16>, vector<8x256xf32> -> vector<8x256xf32>
    %38 = vector.extract_strided_slice %33 {offsets = [0, 0], sizes = [8, 256], strides = [1, 1]} : vector<64x256xf32> to vector<8x256xf32>
    %39 = arith.addf %38, %37 : vector<8x256xf32>
    %40 = arith.negf %39 : vector<8x256xf32>
    %41 = math.exp %40 : vector<8x256xf32>
    %cst_18 = arith.constant 1.000000e+00 : f32
    %42 = vector.broadcast %cst_18 : f32 to vector<8x256xf32>
    %43 = arith.addf %42, %41 : vector<8x256xf32>
    %44 = arith.divf %42, %43 : vector<8x256xf32>
    %45 = math.tanh %39 : vector<8x256xf32>
    %46 = vector.extract_strided_slice %44 {offsets = [0, 0], sizes = [8, 64], strides = [1, 1]} : vector<8x256xf32> to vector<8x64xf32>
    %47 = vector.extract_strided_slice %44 {offsets = [0, 64], sizes = [8, 64], strides = [1, 1]} : vector<8x256xf32> to vector<8x64xf32>
    %48 = vector.extract_strided_slice %45 {offsets = [0, 128], sizes = [8, 64], strides = [1, 1]} : vector<8x256xf32> to vector<8x64xf32>
    %49 = vector.extract_strided_slice %44 {offsets = [0, 192], sizes = [8, 64], strides = [1, 1]} : vector<8x256xf32> to vector<8x64xf32>
    %50 = arith.mulf %47, %35 : vector<8x64xf32>
    %51 = arith.mulf %46, %48 : vector<8x64xf32>
    %52 = arith.addf %50, %51 : vector<8x64xf32>
    %53 = math.tanh %52 : vector<8x64xf32>
    %54 = arith.mulf %49, %53 : vector<8x64xf32>
    %55 = arith.truncf %54 : vector<8x64xf32> to vector<8x64xbf16>
    %cst_19 = arith.constant dense<0.000000e+00> : vector<8x256xf32>
    %56 = tpu.matmul %55, %9, %cst_19 {dimension_numbers = #tpu.dot_dimension_numbers<[1], [0], [0], [1], [0, 0, 1, 1], [], []>} : vector<8x64xbf16>, vector<64x256xbf16>, vector<8x256xf32> -> vector<8x256xf32>
    %57 = vector.extract_strided_slice %33 {offsets = [8, 0], sizes = [8, 256], strides = [1, 1]} : vector<64x256xf32> to vector<8x256xf32>
    %58 = arith.addf %57, %56 : vector<8x256xf32>
    %59 = arith.negf %58 : vector<8x256xf32>
    %60 = math.exp %59 : vector<8x256xf32>
    %cst_20 = arith.constant 1.000000e+00 : f32
    %61 = vector.broadcast %cst_20 : f32 to vector<8x256xf32>
    %62 = arith.addf %61, %60 : vector<8x256xf32>
    %63 = arith.divf %61, %62 : vector<8x256xf32>
    %64 = math.tanh %58 : vector<8x256xf32>
    %65 = vector.extract_strided_slice %63 {offsets = [0, 0], sizes = [8, 64], strides = [1, 1]} : vector<8x256xf32> to vector<8x64xf32>
    %66 = vector.extract_strided_slice %63 {offsets = [0, 64], sizes = [8, 64], strides = [1, 1]} : vector<8x256xf32> to vector<8x64xf32>
    %67 = vector.extract_strided_slice %64 {offsets = [0, 128], sizes = [8, 64], strides = [1, 1]} : vector<8x256xf32> to vector<8x64xf32>
    %68 = vector.extract_strided_slice %63 {offsets = [0, 192], sizes = [8, 64], strides = [1, 1]} : vector<8x256xf32> to vector<8x64xf32>
    %69 = arith.mulf %66, %52 : vector<8x64xf32>
    %70 = arith.mulf %65, %67 : vector<8x64xf32>
    %71 = arith.addf %69, %70 : vector<8x64xf32>
    %72 = math.tanh %71 : vector<8x64xf32>
    %73 = arith.mulf %68, %72 : vector<8x64xf32>
    %74 = arith.truncf %73 : vector<8x64xf32> to vector<8x64xbf16>
    %cst_21 = arith.constant dense<0.000000e+00> : vector<8x256xf32>
    %75 = tpu.matmul %74, %9, %cst_21 {dimension_numbers = #tpu.dot_dimension_numbers<[1], [0], [0], [1], [0, 0, 1, 1], [], []>} : vector<8x64xbf16>, vector<64x256xbf16>, vector<8x256xf32> -> vector<8x256xf32>
    %76 = vector.extract_strided_slice %33 {offsets = [16, 0], sizes = [8, 256], strides = [1, 1]} : vector<64x256xf32> to vector<8x256xf32>
    %77 = arith.addf %76, %75 : vector<8x256xf32>
    %78 = arith.negf %77 : vector<8x256xf32>
    %79 = math.exp %78 : vector<8x256xf32>
    %cst_22 = arith.constant 1.000000e+00 : f32
    %80 = vector.broadcast %cst_22 : f32 to vector<8x256xf32>
    %81 = arith.addf %80, %79 : vector<8x256xf32>
    %82 = arith.divf %80, %81 : vector<8x256xf32>
    %83 = math.tanh %77 : vector<8x256xf32>
    %84 = vector.extract_strided_slice %82 {offsets = [0, 0], sizes = [8, 64], strides = [1, 1]} : vector<8x256xf32> to vector<8x64xf32>
    %85 = vector.extract_strided_slice %82 {offsets = [0, 64], sizes = [8, 64], strides = [1, 1]} : vector<8x256xf32> to vector<8x64xf32>
    %86 = vector.extract_strided_slice %83 {offsets = [0, 128], sizes = [8, 64], strides = [1, 1]} : vector<8x256xf32> to vector<8x64xf32>
    %87 = vector.extract_strided_slice %82 {offsets = [0, 192], sizes = [8, 64], strides = [1, 1]} : vector<8x256xf32> to vector<8x64xf32>
    %88 = arith.mulf %85, %71 : vector<8x64xf32>
    %89 = arith.mulf %84, %86 : vector<8x64xf32>
    %90 = arith.addf %88, %89 : vector<8x64xf32>
    %91 = math.tanh %90 : vector<8x64xf32>
    %92 = arith.mulf %87, %91 : vector<8x64xf32>
    %93 = arith.truncf %92 : vector<8x64xf32> to vector<8x64xbf16>
    %cst_23 = arith.constant dense<0.000000e+00> : vector<8x256xf32>
    %94 = tpu.matmul %93, %9, %cst_23 {dimension_numbers = #tpu.dot_dimension_numbers<[1], [0], [0], [1], [0, 0, 1, 1], [], []>} : vector<8x64xbf16>, vector<64x256xbf16>, vector<8x256xf32> -> vector<8x256xf32>
    %95 = vector.extract_strided_slice %33 {offsets = [24, 0], sizes = [8, 256], strides = [1, 1]} : vector<64x256xf32> to vector<8x256xf32>
    %96 = arith.addf %95, %94 : vector<8x256xf32>
    %97 = arith.negf %96 : vector<8x256xf32>
    %98 = math.exp %97 : vector<8x256xf32>
    %cst_24 = arith.constant 1.000000e+00 : f32
    %99 = vector.broadcast %cst_24 : f32 to vector<8x256xf32>
    %100 = arith.addf %99, %98 : vector<8x256xf32>
    %101 = arith.divf %99, %100 : vector<8x256xf32>
    %102 = math.tanh %96 : vector<8x256xf32>
    %103 = vector.extract_strided_slice %101 {offsets = [0, 0], sizes = [8, 64], strides = [1, 1]} : vector<8x256xf32> to vector<8x64xf32>
    %104 = vector.extract_strided_slice %101 {offsets = [0, 64], sizes = [8, 64], strides = [1, 1]} : vector<8x256xf32> to vector<8x64xf32>
    %105 = vector.extract_strided_slice %102 {offsets = [0, 128], sizes = [8, 64], strides = [1, 1]} : vector<8x256xf32> to vector<8x64xf32>
    %106 = vector.extract_strided_slice %101 {offsets = [0, 192], sizes = [8, 64], strides = [1, 1]} : vector<8x256xf32> to vector<8x64xf32>
    %107 = arith.mulf %104, %90 : vector<8x64xf32>
    %108 = arith.mulf %103, %105 : vector<8x64xf32>
    %109 = arith.addf %107, %108 : vector<8x64xf32>
    %110 = math.tanh %109 : vector<8x64xf32>
    %111 = arith.mulf %106, %110 : vector<8x64xf32>
    %112 = arith.truncf %111 : vector<8x64xf32> to vector<8x64xbf16>
    %cst_25 = arith.constant dense<0.000000e+00> : vector<8x256xf32>
    %113 = tpu.matmul %112, %9, %cst_25 {dimension_numbers = #tpu.dot_dimension_numbers<[1], [0], [0], [1], [0, 0, 1, 1], [], []>} : vector<8x64xbf16>, vector<64x256xbf16>, vector<8x256xf32> -> vector<8x256xf32>
    %114 = vector.extract_strided_slice %33 {offsets = [32, 0], sizes = [8, 256], strides = [1, 1]} : vector<64x256xf32> to vector<8x256xf32>
    %115 = arith.addf %114, %113 : vector<8x256xf32>
    %116 = arith.negf %115 : vector<8x256xf32>
    %117 = math.exp %116 : vector<8x256xf32>
    %cst_26 = arith.constant 1.000000e+00 : f32
    %118 = vector.broadcast %cst_26 : f32 to vector<8x256xf32>
    %119 = arith.addf %118, %117 : vector<8x256xf32>
    %120 = arith.divf %118, %119 : vector<8x256xf32>
    %121 = math.tanh %115 : vector<8x256xf32>
    %122 = vector.extract_strided_slice %120 {offsets = [0, 0], sizes = [8, 64], strides = [1, 1]} : vector<8x256xf32> to vector<8x64xf32>
    %123 = vector.extract_strided_slice %120 {offsets = [0, 64], sizes = [8, 64], strides = [1, 1]} : vector<8x256xf32> to vector<8x64xf32>
    %124 = vector.extract_strided_slice %121 {offsets = [0, 128], sizes = [8, 64], strides = [1, 1]} : vector<8x256xf32> to vector<8x64xf32>
    %125 = vector.extract_strided_slice %120 {offsets = [0, 192], sizes = [8, 64], strides = [1, 1]} : vector<8x256xf32> to vector<8x64xf32>
    %126 = arith.mulf %123, %109 : vector<8x64xf32>
    %127 = arith.mulf %122, %124 : vector<8x64xf32>
    %128 = arith.addf %126, %127 : vector<8x64xf32>
    %129 = math.tanh %128 : vector<8x64xf32>
    %130 = arith.mulf %125, %129 : vector<8x64xf32>
    %131 = arith.truncf %130 : vector<8x64xf32> to vector<8x64xbf16>
    %cst_27 = arith.constant dense<0.000000e+00> : vector<8x256xf32>
    %132 = tpu.matmul %131, %9, %cst_27 {dimension_numbers = #tpu.dot_dimension_numbers<[1], [0], [0], [1], [0, 0, 1, 1], [], []>} : vector<8x64xbf16>, vector<64x256xbf16>, vector<8x256xf32> -> vector<8x256xf32>
    %133 = vector.extract_strided_slice %33 {offsets = [40, 0], sizes = [8, 256], strides = [1, 1]} : vector<64x256xf32> to vector<8x256xf32>
    %134 = arith.addf %133, %132 : vector<8x256xf32>
    %135 = arith.negf %134 : vector<8x256xf32>
    %136 = math.exp %135 : vector<8x256xf32>
    %cst_28 = arith.constant 1.000000e+00 : f32
    %137 = vector.broadcast %cst_28 : f32 to vector<8x256xf32>
    %138 = arith.addf %137, %136 : vector<8x256xf32>
    %139 = arith.divf %137, %138 : vector<8x256xf32>
    %140 = math.tanh %134 : vector<8x256xf32>
    %141 = vector.extract_strided_slice %139 {offsets = [0, 0], sizes = [8, 64], strides = [1, 1]} : vector<8x256xf32> to vector<8x64xf32>
    %142 = vector.extract_strided_slice %139 {offsets = [0, 64], sizes = [8, 64], strides = [1, 1]} : vector<8x256xf32> to vector<8x64xf32>
    %143 = vector.extract_strided_slice %140 {offsets = [0, 128], sizes = [8, 64], strides = [1, 1]} : vector<8x256xf32> to vector<8x64xf32>
    %144 = vector.extract_strided_slice %139 {offsets = [0, 192], sizes = [8, 64], strides = [1, 1]} : vector<8x256xf32> to vector<8x64xf32>
    %145 = arith.mulf %142, %128 : vector<8x64xf32>
    %146 = arith.mulf %141, %143 : vector<8x64xf32>
    %147 = arith.addf %145, %146 : vector<8x64xf32>
    %148 = math.tanh %147 : vector<8x64xf32>
    %149 = arith.mulf %144, %148 : vector<8x64xf32>
    %150 = arith.truncf %149 : vector<8x64xf32> to vector<8x64xbf16>
    %cst_29 = arith.constant dense<0.000000e+00> : vector<8x256xf32>
    %151 = tpu.matmul %150, %9, %cst_29 {dimension_numbers = #tpu.dot_dimension_numbers<[1], [0], [0], [1], [0, 0, 1, 1], [], []>} : vector<8x64xbf16>, vector<64x256xbf16>, vector<8x256xf32> -> vector<8x256xf32>
    %152 = vector.extract_strided_slice %33 {offsets = [48, 0], sizes = [8, 256], strides = [1, 1]} : vector<64x256xf32> to vector<8x256xf32>
    %153 = arith.addf %152, %151 : vector<8x256xf32>
    %154 = arith.negf %153 : vector<8x256xf32>
    %155 = math.exp %154 : vector<8x256xf32>
    %cst_30 = arith.constant 1.000000e+00 : f32
    %156 = vector.broadcast %cst_30 : f32 to vector<8x256xf32>
    %157 = arith.addf %156, %155 : vector<8x256xf32>
    %158 = arith.divf %156, %157 : vector<8x256xf32>
    %159 = math.tanh %153 : vector<8x256xf32>
    %160 = vector.extract_strided_slice %158 {offsets = [0, 0], sizes = [8, 64], strides = [1, 1]} : vector<8x256xf32> to vector<8x64xf32>
    %161 = vector.extract_strided_slice %158 {offsets = [0, 64], sizes = [8, 64], strides = [1, 1]} : vector<8x256xf32> to vector<8x64xf32>
    %162 = vector.extract_strided_slice %159 {offsets = [0, 128], sizes = [8, 64], strides = [1, 1]} : vector<8x256xf32> to vector<8x64xf32>
    %163 = vector.extract_strided_slice %158 {offsets = [0, 192], sizes = [8, 64], strides = [1, 1]} : vector<8x256xf32> to vector<8x64xf32>
    %164 = arith.mulf %161, %147 : vector<8x64xf32>
    %165 = arith.mulf %160, %162 : vector<8x64xf32>
    %166 = arith.addf %164, %165 : vector<8x64xf32>
    %167 = math.tanh %166 : vector<8x64xf32>
    %168 = arith.mulf %163, %167 : vector<8x64xf32>
    %169 = arith.truncf %168 : vector<8x64xf32> to vector<8x64xbf16>
    %cst_31 = arith.constant dense<0.000000e+00> : vector<8x256xf32>
    %170 = tpu.matmul %169, %9, %cst_31 {dimension_numbers = #tpu.dot_dimension_numbers<[1], [0], [0], [1], [0, 0, 1, 1], [], []>} : vector<8x64xbf16>, vector<64x256xbf16>, vector<8x256xf32> -> vector<8x256xf32>
    %171 = vector.extract_strided_slice %33 {offsets = [56, 0], sizes = [8, 256], strides = [1, 1]} : vector<64x256xf32> to vector<8x256xf32>
    %172 = arith.addf %171, %170 : vector<8x256xf32>
    %173 = arith.negf %172 : vector<8x256xf32>
    %174 = math.exp %173 : vector<8x256xf32>
    %cst_32 = arith.constant 1.000000e+00 : f32
    %175 = vector.broadcast %cst_32 : f32 to vector<8x256xf32>
    %176 = arith.addf %175, %174 : vector<8x256xf32>
    %177 = arith.divf %175, %176 : vector<8x256xf32>
    %178 = math.tanh %172 : vector<8x256xf32>
    %179 = vector.extract_strided_slice %177 {offsets = [0, 0], sizes = [8, 64], strides = [1, 1]} : vector<8x256xf32> to vector<8x64xf32>
    %180 = vector.extract_strided_slice %177 {offsets = [0, 64], sizes = [8, 64], strides = [1, 1]} : vector<8x256xf32> to vector<8x64xf32>
    %181 = vector.extract_strided_slice %178 {offsets = [0, 128], sizes = [8, 64], strides = [1, 1]} : vector<8x256xf32> to vector<8x64xf32>
    %182 = vector.extract_strided_slice %177 {offsets = [0, 192], sizes = [8, 64], strides = [1, 1]} : vector<8x256xf32> to vector<8x64xf32>
    %183 = arith.mulf %180, %166 : vector<8x64xf32>
    %184 = arith.mulf %179, %181 : vector<8x64xf32>
    %185 = arith.addf %183, %184 : vector<8x64xf32>
    %186 = math.tanh %185 : vector<8x64xf32>
    %187 = arith.mulf %182, %186 : vector<8x64xf32>
    %188 = vector.extract_strided_slice %54 {offsets = [0, 0], sizes = [8, 32], strides = [1, 1]} : vector<8x64xf32> to vector<8x32xf32>
    %189 = vector.extract_strided_slice %73 {offsets = [0, 0], sizes = [8, 32], strides = [1, 1]} : vector<8x64xf32> to vector<8x32xf32>
    %190 = vector.extract_strided_slice %92 {offsets = [0, 0], sizes = [8, 32], strides = [1, 1]} : vector<8x64xf32> to vector<8x32xf32>
    %191 = vector.extract_strided_slice %111 {offsets = [0, 0], sizes = [8, 32], strides = [1, 1]} : vector<8x64xf32> to vector<8x32xf32>
    %192 = vector.extract_strided_slice %130 {offsets = [0, 0], sizes = [8, 32], strides = [1, 1]} : vector<8x64xf32> to vector<8x32xf32>
    %193 = vector.extract_strided_slice %149 {offsets = [0, 0], sizes = [8, 32], strides = [1, 1]} : vector<8x64xf32> to vector<8x32xf32>
    %194 = vector.extract_strided_slice %168 {offsets = [0, 0], sizes = [8, 32], strides = [1, 1]} : vector<8x64xf32> to vector<8x32xf32>
    %195 = vector.extract_strided_slice %187 {offsets = [0, 0], sizes = [8, 32], strides = [1, 1]} : vector<8x64xf32> to vector<8x32xf32>
    %196 = tpu.concatenate %188, %189, %190, %191, %192, %193, %194, %195 in 0 : vector<8x32xf32>, vector<8x32xf32>, vector<8x32xf32>, vector<8x32xf32>, vector<8x32xf32>, vector<8x32xf32>, vector<8x32xf32>, vector<8x32xf32> -> vector<64x32xf32>
    %197 = vector.extract_strided_slice %187 {offsets = [0, 32], sizes = [8, 32], strides = [1, 1]} : vector<8x64xf32> to vector<8x32xf32>
    %198 = vector.extract_strided_slice %168 {offsets = [0, 32], sizes = [8, 32], strides = [1, 1]} : vector<8x64xf32> to vector<8x32xf32>
    %199 = vector.extract_strided_slice %149 {offsets = [0, 32], sizes = [8, 32], strides = [1, 1]} : vector<8x64xf32> to vector<8x32xf32>
    %200 = vector.extract_strided_slice %130 {offsets = [0, 32], sizes = [8, 32], strides = [1, 1]} : vector<8x64xf32> to vector<8x32xf32>
    %201 = vector.extract_strided_slice %111 {offsets = [0, 32], sizes = [8, 32], strides = [1, 1]} : vector<8x64xf32> to vector<8x32xf32>
    %202 = vector.extract_strided_slice %92 {offsets = [0, 32], sizes = [8, 32], strides = [1, 1]} : vector<8x64xf32> to vector<8x32xf32>
    %203 = vector.extract_strided_slice %73 {offsets = [0, 32], sizes = [8, 32], strides = [1, 1]} : vector<8x64xf32> to vector<8x32xf32>
    %204 = vector.extract_strided_slice %54 {offsets = [0, 32], sizes = [8, 32], strides = [1, 1]} : vector<8x64xf32> to vector<8x32xf32>
    %205 = tpu.concatenate %197, %198, %199, %200, %201, %202, %203, %204 in 0 : vector<8x32xf32>, vector<8x32xf32>, vector<8x32xf32>, vector<8x32xf32>, vector<8x32xf32>, vector<8x32xf32>, vector<8x32xf32>, vector<8x32xf32> -> vector<64x32xf32>
    %206 = tpu.concatenate %196, %205 in 1 : vector<64x32xf32>, vector<64x32xf32> -> vector<64x64xf32>
    %207 = arith.truncf %206 : vector<64x64xf32> to vector<64x64xbf16>
    %c0_33 = arith.constant 0 : index
    %c0_34 = arith.constant 0 : index
    %c0_35 = arith.constant 0 : index
    %208 = vector.load %arg4[%c0_33, %c0_34, %c0_35] : memref<2x64x128xbf16, #tpu.memory_space<vmem>>, vector<1x64x128xbf16>
    %209 = vector.shape_cast %208 : vector<1x64x128xbf16> to vector<64x128xbf16>
    %c1_36 = arith.constant 1 : index
    %c0_37 = arith.constant 0 : index
    %c0_38 = arith.constant 0 : index
    %210 = vector.load %arg4[%c1_36, %c0_37, %c0_38] : memref<2x64x128xbf16, #tpu.memory_space<vmem>>, vector<1x64x128xbf16>
    %211 = vector.shape_cast %210 : vector<1x64x128xbf16> to vector<64x128xbf16>
    %c0_39 = arith.constant 0 : index
    %c0_40 = arith.constant 0 : index
    %c0_41 = arith.constant 0 : index
    %212 = vector.load %arg5[%c0_39, %c0_40, %c0_41] : memref<2x1x128xf32, #tpu.memory_space<vmem>>, vector<1x1x128xf32>
    %213 = vector.shape_cast %212 : vector<1x1x128xf32> to vector<1x128xf32>
    %c1_42 = arith.constant 1 : index
    %c0_43 = arith.constant 0 : index
    %c0_44 = arith.constant 0 : index
    %214 = vector.load %arg5[%c1_42, %c0_43, %c0_44] : memref<2x1x128xf32, #tpu.memory_space<vmem>>, vector<1x1x128xf32>
    %215 = vector.shape_cast %214 : vector<1x1x128xf32> to vector<1x128xf32>
    %c0_45 = arith.constant 0 : index
    %c0_46 = arith.constant 0 : index
    %216 = vector.load %arg6[%c0_45, %c0_46] : memref<32x128xbf16, #tpu.memory_space<vmem>>, vector<32x128xbf16>
    %cst_47 = arith.constant dense<0.000000e+00> : vector<64x128xf32>
    %217 = tpu.matmul %207, %209, %cst_47 {dimension_numbers = #tpu.dot_dimension_numbers<[1], [0], [0], [1], [0, 0, 1, 1], [], []>} : vector<64x64xbf16>, vector<64x128xbf16>, vector<64x128xf32> -> vector<64x128xf32>
    %218 = vector.broadcast %213 : vector<1x128xf32> to vector<64x128xf32>
    %219 = arith.addf %217, %218 : vector<64x128xf32>
    %cst_48 = arith.constant 0.000000e+00 : f32
    %220 = vector.broadcast %cst_48 : f32 to vector<8x32xf32>
    %cst_49 = arith.constant 0.000000e+00 : f32
    %221 = vector.broadcast %cst_49 : f32 to vector<8x32xf32>
    %222 = vector.extract_strided_slice %219 {offsets = [0, 0], sizes = [8, 128], strides = [1, 1]} : vector<64x128xf32> to vector<8x128xf32>
    %223 = arith.truncf %220 : vector<8x32xf32> to vector<8x32xbf16>
    %cst_50 = arith.constant dense<0.000000e+00> : vector<8x128xf32>
    %224 = tpu.matmul %223, %216, %cst_50 {dimension_numbers = #tpu.dot_dimension_numbers<[1], [0], [0], [1], [0, 0, 1, 1], [], []>} : vector<8x32xbf16>, vector<32x128xbf16>, vector<8x128xf32> -> vector<8x128xf32>
    %225 = arith.addf %222, %224 : vector<8x128xf32>
    %226 = arith.negf %225 : vector<8x128xf32>
    %227 = math.exp %226 : vector<8x128xf32>
    %cst_51 = arith.constant 1.000000e+00 : f32
    %228 = vector.broadcast %cst_51 : f32 to vector<8x128xf32>
    %229 = arith.addf %228, %227 : vector<8x128xf32>
    %230 = arith.divf %228, %229 : vector<8x128xf32>
    %231 = math.tanh %225 : vector<8x128xf32>
    %232 = vector.extract_strided_slice %230 {offsets = [0, 0], sizes = [8, 32], strides = [1, 1]} : vector<8x128xf32> to vector<8x32xf32>
    %233 = vector.extract_strided_slice %230 {offsets = [0, 32], sizes = [8, 32], strides = [1, 1]} : vector<8x128xf32> to vector<8x32xf32>
    %234 = vector.extract_strided_slice %231 {offsets = [0, 64], sizes = [8, 32], strides = [1, 1]} : vector<8x128xf32> to vector<8x32xf32>
    %235 = vector.extract_strided_slice %230 {offsets = [0, 96], sizes = [8, 32], strides = [1, 1]} : vector<8x128xf32> to vector<8x32xf32>
    %236 = arith.mulf %233, %221 : vector<8x32xf32>
    %237 = arith.mulf %232, %234 : vector<8x32xf32>
    %238 = arith.addf %236, %237 : vector<8x32xf32>
    %239 = math.tanh %238 : vector<8x32xf32>
    %240 = arith.mulf %235, %239 : vector<8x32xf32>
    %241 = vector.extract_strided_slice %219 {offsets = [8, 0], sizes = [8, 128], strides = [1, 1]} : vector<64x128xf32> to vector<8x128xf32>
    %242 = arith.truncf %240 : vector<8x32xf32> to vector<8x32xbf16>
    %cst_52 = arith.constant dense<0.000000e+00> : vector<8x128xf32>
    %243 = tpu.matmul %242, %216, %cst_52 {dimension_numbers = #tpu.dot_dimension_numbers<[1], [0], [0], [1], [0, 0, 1, 1], [], []>} : vector<8x32xbf16>, vector<32x128xbf16>, vector<8x128xf32> -> vector<8x128xf32>
    %244 = arith.addf %241, %243 : vector<8x128xf32>
    %245 = arith.negf %244 : vector<8x128xf32>
    %246 = math.exp %245 : vector<8x128xf32>
    %cst_53 = arith.constant 1.000000e+00 : f32
    %247 = vector.broadcast %cst_53 : f32 to vector<8x128xf32>
    %248 = arith.addf %247, %246 : vector<8x128xf32>
    %249 = arith.divf %247, %248 : vector<8x128xf32>
    %250 = math.tanh %244 : vector<8x128xf32>
    %251 = vector.extract_strided_slice %249 {offsets = [0, 0], sizes = [8, 32], strides = [1, 1]} : vector<8x128xf32> to vector<8x32xf32>
    %252 = vector.extract_strided_slice %249 {offsets = [0, 32], sizes = [8, 32], strides = [1, 1]} : vector<8x128xf32> to vector<8x32xf32>
    %253 = vector.extract_strided_slice %250 {offsets = [0, 64], sizes = [8, 32], strides = [1, 1]} : vector<8x128xf32> to vector<8x32xf32>
    %254 = vector.extract_strided_slice %249 {offsets = [0, 96], sizes = [8, 32], strides = [1, 1]} : vector<8x128xf32> to vector<8x32xf32>
    %255 = arith.mulf %252, %238 : vector<8x32xf32>
    %256 = arith.mulf %251, %253 : vector<8x32xf32>
    %257 = arith.addf %255, %256 : vector<8x32xf32>
    %258 = math.tanh %257 : vector<8x32xf32>
    %259 = arith.mulf %254, %258 : vector<8x32xf32>
    %260 = vector.extract_strided_slice %219 {offsets = [16, 0], sizes = [8, 128], strides = [1, 1]} : vector<64x128xf32> to vector<8x128xf32>
    %261 = arith.truncf %259 : vector<8x32xf32> to vector<8x32xbf16>
    %cst_54 = arith.constant dense<0.000000e+00> : vector<8x128xf32>
    %262 = tpu.matmul %261, %216, %cst_54 {dimension_numbers = #tpu.dot_dimension_numbers<[1], [0], [0], [1], [0, 0, 1, 1], [], []>} : vector<8x32xbf16>, vector<32x128xbf16>, vector<8x128xf32> -> vector<8x128xf32>
    %263 = arith.addf %260, %262 : vector<8x128xf32>
    %264 = arith.negf %263 : vector<8x128xf32>
    %265 = math.exp %264 : vector<8x128xf32>
    %cst_55 = arith.constant 1.000000e+00 : f32
    %266 = vector.broadcast %cst_55 : f32 to vector<8x128xf32>
    %267 = arith.addf %266, %265 : vector<8x128xf32>
    %268 = arith.divf %266, %267 : vector<8x128xf32>
    %269 = math.tanh %263 : vector<8x128xf32>
    %270 = vector.extract_strided_slice %268 {offsets = [0, 0], sizes = [8, 32], strides = [1, 1]} : vector<8x128xf32> to vector<8x32xf32>
    %271 = vector.extract_strided_slice %268 {offsets = [0, 32], sizes = [8, 32], strides = [1, 1]} : vector<8x128xf32> to vector<8x32xf32>
    %272 = vector.extract_strided_slice %269 {offsets = [0, 64], sizes = [8, 32], strides = [1, 1]} : vector<8x128xf32> to vector<8x32xf32>
    %273 = vector.extract_strided_slice %268 {offsets = [0, 96], sizes = [8, 32], strides = [1, 1]} : vector<8x128xf32> to vector<8x32xf32>
    %274 = arith.mulf %271, %257 : vector<8x32xf32>
    %275 = arith.mulf %270, %272 : vector<8x32xf32>
    %276 = arith.addf %274, %275 : vector<8x32xf32>
    %277 = math.tanh %276 : vector<8x32xf32>
    %278 = arith.mulf %273, %277 : vector<8x32xf32>
    %279 = vector.extract_strided_slice %219 {offsets = [24, 0], sizes = [8, 128], strides = [1, 1]} : vector<64x128xf32> to vector<8x128xf32>
    %280 = arith.truncf %278 : vector<8x32xf32> to vector<8x32xbf16>
    %cst_56 = arith.constant dense<0.000000e+00> : vector<8x128xf32>
    %281 = tpu.matmul %280, %216, %cst_56 {dimension_numbers = #tpu.dot_dimension_numbers<[1], [0], [0], [1], [0, 0, 1, 1], [], []>} : vector<8x32xbf16>, vector<32x128xbf16>, vector<8x128xf32> -> vector<8x128xf32>
    %282 = arith.addf %279, %281 : vector<8x128xf32>
    %283 = arith.negf %282 : vector<8x128xf32>
    %284 = math.exp %283 : vector<8x128xf32>
    %cst_57 = arith.constant 1.000000e+00 : f32
    %285 = vector.broadcast %cst_57 : f32 to vector<8x128xf32>
    %286 = arith.addf %285, %284 : vector<8x128xf32>
    %287 = arith.divf %285, %286 : vector<8x128xf32>
    %288 = math.tanh %282 : vector<8x128xf32>
    %289 = vector.extract_strided_slice %287 {offsets = [0, 0], sizes = [8, 32], strides = [1, 1]} : vector<8x128xf32> to vector<8x32xf32>
    %290 = vector.extract_strided_slice %287 {offsets = [0, 32], sizes = [8, 32], strides = [1, 1]} : vector<8x128xf32> to vector<8x32xf32>
    %291 = vector.extract_strided_slice %288 {offsets = [0, 64], sizes = [8, 32], strides = [1, 1]} : vector<8x128xf32> to vector<8x32xf32>
    %292 = vector.extract_strided_slice %287 {offsets = [0, 96], sizes = [8, 32], strides = [1, 1]} : vector<8x128xf32> to vector<8x32xf32>
    %293 = arith.mulf %290, %276 : vector<8x32xf32>
    %294 = arith.mulf %289, %291 : vector<8x32xf32>
    %295 = arith.addf %293, %294 : vector<8x32xf32>
    %296 = math.tanh %295 : vector<8x32xf32>
    %297 = arith.mulf %292, %296 : vector<8x32xf32>
    %298 = vector.extract_strided_slice %219 {offsets = [32, 0], sizes = [8, 128], strides = [1, 1]} : vector<64x128xf32> to vector<8x128xf32>
    %299 = arith.truncf %297 : vector<8x32xf32> to vector<8x32xbf16>
    %cst_58 = arith.constant dense<0.000000e+00> : vector<8x128xf32>
    %300 = tpu.matmul %299, %216, %cst_58 {dimension_numbers = #tpu.dot_dimension_numbers<[1], [0], [0], [1], [0, 0, 1, 1], [], []>} : vector<8x32xbf16>, vector<32x128xbf16>, vector<8x128xf32> -> vector<8x128xf32>
    %301 = arith.addf %298, %300 : vector<8x128xf32>
    %302 = arith.negf %301 : vector<8x128xf32>
    %303 = math.exp %302 : vector<8x128xf32>
    %cst_59 = arith.constant 1.000000e+00 : f32
    %304 = vector.broadcast %cst_59 : f32 to vector<8x128xf32>
    %305 = arith.addf %304, %303 : vector<8x128xf32>
    %306 = arith.divf %304, %305 : vector<8x128xf32>
    %307 = math.tanh %301 : vector<8x128xf32>
    %308 = vector.extract_strided_slice %306 {offsets = [0, 0], sizes = [8, 32], strides = [1, 1]} : vector<8x128xf32> to vector<8x32xf32>
    %309 = vector.extract_strided_slice %306 {offsets = [0, 32], sizes = [8, 32], strides = [1, 1]} : vector<8x128xf32> to vector<8x32xf32>
    %310 = vector.extract_strided_slice %307 {offsets = [0, 64], sizes = [8, 32], strides = [1, 1]} : vector<8x128xf32> to vector<8x32xf32>
    %311 = vector.extract_strided_slice %306 {offsets = [0, 96], sizes = [8, 32], strides = [1, 1]} : vector<8x128xf32> to vector<8x32xf32>
    %312 = arith.mulf %309, %295 : vector<8x32xf32>
    %313 = arith.mulf %308, %310 : vector<8x32xf32>
    %314 = arith.addf %312, %313 : vector<8x32xf32>
    %315 = math.tanh %314 : vector<8x32xf32>
    %316 = arith.mulf %311, %315 : vector<8x32xf32>
    %317 = vector.extract_strided_slice %219 {offsets = [40, 0], sizes = [8, 128], strides = [1, 1]} : vector<64x128xf32> to vector<8x128xf32>
    %318 = arith.truncf %316 : vector<8x32xf32> to vector<8x32xbf16>
    %cst_60 = arith.constant dense<0.000000e+00> : vector<8x128xf32>
    %319 = tpu.matmul %318, %216, %cst_60 {dimension_numbers = #tpu.dot_dimension_numbers<[1], [0], [0], [1], [0, 0, 1, 1], [], []>} : vector<8x32xbf16>, vector<32x128xbf16>, vector<8x128xf32> -> vector<8x128xf32>
    %320 = arith.addf %317, %319 : vector<8x128xf32>
    %321 = arith.negf %320 : vector<8x128xf32>
    %322 = math.exp %321 : vector<8x128xf32>
    %cst_61 = arith.constant 1.000000e+00 : f32
    %323 = vector.broadcast %cst_61 : f32 to vector<8x128xf32>
    %324 = arith.addf %323, %322 : vector<8x128xf32>
    %325 = arith.divf %323, %324 : vector<8x128xf32>
    %326 = math.tanh %320 : vector<8x128xf32>
    %327 = vector.extract_strided_slice %325 {offsets = [0, 0], sizes = [8, 32], strides = [1, 1]} : vector<8x128xf32> to vector<8x32xf32>
    %328 = vector.extract_strided_slice %325 {offsets = [0, 32], sizes = [8, 32], strides = [1, 1]} : vector<8x128xf32> to vector<8x32xf32>
    %329 = vector.extract_strided_slice %326 {offsets = [0, 64], sizes = [8, 32], strides = [1, 1]} : vector<8x128xf32> to vector<8x32xf32>
    %330 = vector.extract_strided_slice %325 {offsets = [0, 96], sizes = [8, 32], strides = [1, 1]} : vector<8x128xf32> to vector<8x32xf32>
    %331 = arith.mulf %328, %314 : vector<8x32xf32>
    %332 = arith.mulf %327, %329 : vector<8x32xf32>
    %333 = arith.addf %331, %332 : vector<8x32xf32>
    %334 = math.tanh %333 : vector<8x32xf32>
    %335 = arith.mulf %330, %334 : vector<8x32xf32>
    %336 = vector.extract_strided_slice %219 {offsets = [48, 0], sizes = [8, 128], strides = [1, 1]} : vector<64x128xf32> to vector<8x128xf32>
    %337 = arith.truncf %335 : vector<8x32xf32> to vector<8x32xbf16>
    %cst_62 = arith.constant dense<0.000000e+00> : vector<8x128xf32>
    %338 = tpu.matmul %337, %216, %cst_62 {dimension_numbers = #tpu.dot_dimension_numbers<[1], [0], [0], [1], [0, 0, 1, 1], [], []>} : vector<8x32xbf16>, vector<32x128xbf16>, vector<8x128xf32> -> vector<8x128xf32>
    %339 = arith.addf %336, %338 : vector<8x128xf32>
    %340 = arith.negf %339 : vector<8x128xf32>
    %341 = math.exp %340 : vector<8x128xf32>
    %cst_63 = arith.constant 1.000000e+00 : f32
    %342 = vector.broadcast %cst_63 : f32 to vector<8x128xf32>
    %343 = arith.addf %342, %341 : vector<8x128xf32>
    %344 = arith.divf %342, %343 : vector<8x128xf32>
    %345 = math.tanh %339 : vector<8x128xf32>
    %346 = vector.extract_strided_slice %344 {offsets = [0, 0], sizes = [8, 32], strides = [1, 1]} : vector<8x128xf32> to vector<8x32xf32>
    %347 = vector.extract_strided_slice %344 {offsets = [0, 32], sizes = [8, 32], strides = [1, 1]} : vector<8x128xf32> to vector<8x32xf32>
    %348 = vector.extract_strided_slice %345 {offsets = [0, 64], sizes = [8, 32], strides = [1, 1]} : vector<8x128xf32> to vector<8x32xf32>
    %349 = vector.extract_strided_slice %344 {offsets = [0, 96], sizes = [8, 32], strides = [1, 1]} : vector<8x128xf32> to vector<8x32xf32>
    %350 = arith.mulf %347, %333 : vector<8x32xf32>
    %351 = arith.mulf %346, %348 : vector<8x32xf32>
    %352 = arith.addf %350, %351 : vector<8x32xf32>
    %353 = math.tanh %352 : vector<8x32xf32>
    %354 = arith.mulf %349, %353 : vector<8x32xf32>
    %355 = vector.extract_strided_slice %219 {offsets = [56, 0], sizes = [8, 128], strides = [1, 1]} : vector<64x128xf32> to vector<8x128xf32>
    %356 = arith.truncf %354 : vector<8x32xf32> to vector<8x32xbf16>
    %cst_64 = arith.constant dense<0.000000e+00> : vector<8x128xf32>
    %357 = tpu.matmul %356, %216, %cst_64 {dimension_numbers = #tpu.dot_dimension_numbers<[1], [0], [0], [1], [0, 0, 1, 1], [], []>} : vector<8x32xbf16>, vector<32x128xbf16>, vector<8x128xf32> -> vector<8x128xf32>
    %358 = arith.addf %355, %357 : vector<8x128xf32>
    %359 = arith.negf %358 : vector<8x128xf32>
    %360 = math.exp %359 : vector<8x128xf32>
    %cst_65 = arith.constant 1.000000e+00 : f32
    %361 = vector.broadcast %cst_65 : f32 to vector<8x128xf32>
    %362 = arith.addf %361, %360 : vector<8x128xf32>
    %363 = arith.divf %361, %362 : vector<8x128xf32>
    %364 = math.tanh %358 : vector<8x128xf32>
    %365 = vector.extract_strided_slice %363 {offsets = [0, 0], sizes = [8, 32], strides = [1, 1]} : vector<8x128xf32> to vector<8x32xf32>
    %366 = vector.extract_strided_slice %363 {offsets = [0, 32], sizes = [8, 32], strides = [1, 1]} : vector<8x128xf32> to vector<8x32xf32>
    %367 = vector.extract_strided_slice %364 {offsets = [0, 64], sizes = [8, 32], strides = [1, 1]} : vector<8x128xf32> to vector<8x32xf32>
    %368 = vector.extract_strided_slice %363 {offsets = [0, 96], sizes = [8, 32], strides = [1, 1]} : vector<8x128xf32> to vector<8x32xf32>
    %369 = arith.mulf %366, %352 : vector<8x32xf32>
    %370 = arith.mulf %365, %367 : vector<8x32xf32>
    %371 = arith.addf %369, %370 : vector<8x32xf32>
    %372 = math.tanh %371 : vector<8x32xf32>
    %373 = arith.mulf %368, %372 : vector<8x32xf32>
    %374 = vector.extract_strided_slice %207 {offsets = [56, 0], sizes = [8, 64], strides = [1, 1]} : vector<64x64xbf16> to vector<8x64xbf16>
    %cst_66 = arith.constant dense<0.000000e+00> : vector<8x128xf32>
    %375 = tpu.matmul %374, %211, %cst_66 {dimension_numbers = #tpu.dot_dimension_numbers<[1], [0], [0], [1], [0, 0, 1, 1], [], []>} : vector<8x64xbf16>, vector<64x128xbf16>, vector<8x128xf32> -> vector<8x128xf32>
    %376 = vector.broadcast %215 : vector<1x128xf32> to vector<8x128xf32>
    %377 = arith.addf %375, %376 : vector<8x128xf32>
    %cst_67 = arith.constant 0.000000e+00 : f32
    %378 = vector.broadcast %cst_67 : f32 to vector<8x32xf32>
    %379 = arith.negf %377 : vector<8x128xf32>
    %380 = math.exp %379 : vector<8x128xf32>
    %cst_68 = arith.constant 1.000000e+00 : f32
    %381 = vector.broadcast %cst_68 : f32 to vector<8x128xf32>
    %382 = arith.addf %381, %380 : vector<8x128xf32>
    %383 = arith.divf %381, %382 : vector<8x128xf32>
    %384 = math.tanh %377 : vector<8x128xf32>
    %385 = vector.extract_strided_slice %383 {offsets = [0, 0], sizes = [8, 32], strides = [1, 1]} : vector<8x128xf32> to vector<8x32xf32>
    %386 = vector.extract_strided_slice %383 {offsets = [0, 32], sizes = [8, 32], strides = [1, 1]} : vector<8x128xf32> to vector<8x32xf32>
    %387 = vector.extract_strided_slice %384 {offsets = [0, 64], sizes = [8, 32], strides = [1, 1]} : vector<8x128xf32> to vector<8x32xf32>
    %388 = vector.extract_strided_slice %383 {offsets = [0, 96], sizes = [8, 32], strides = [1, 1]} : vector<8x128xf32> to vector<8x32xf32>
    %389 = arith.mulf %386, %378 : vector<8x32xf32>
    %390 = arith.mulf %385, %387 : vector<8x32xf32>
    %391 = arith.addf %389, %390 : vector<8x32xf32>
    %392 = math.tanh %391 : vector<8x32xf32>
    %393 = arith.mulf %388, %392 : vector<8x32xf32>
    %394 = tpu.concatenate %373, %393 in 1 : vector<8x32xf32>, vector<8x32xf32> -> vector<8x64xf32>
    %c0_69 = arith.constant 0 : index
    %c0_70 = arith.constant 0 : index
    %395 = vector.load %arg7[%c0_69, %c0_70] : memref<64x4xf32, #tpu.memory_space<vmem>>, vector<64x4xf32>
    %cst_71 = arith.constant dense<0.000000e+00> : vector<8x4xf32>
    %396 = tpu.matmul %394, %395, %cst_71 {dimension_numbers = #tpu.dot_dimension_numbers<[1], [0], [0], [1], [0, 0, 1, 1], [], []>} : vector<8x64xf32>, vector<64x4xf32>, vector<8x4xf32> -> vector<8x4xf32>
    %c0_72 = arith.constant 0 : index
    %c0_73 = arith.constant 0 : index
    %397 = vector.load %arg8[%c0_72, %c0_73] : memref<1x4xf32, #tpu.memory_space<vmem>>, vector<1x4xf32>
    %398 = vector.broadcast %397 : vector<1x4xf32> to vector<8x4xf32>
    %399 = arith.addf %396, %398 : vector<8x4xf32>
    %c0_74 = arith.constant 0 : index
    %c0_75 = arith.constant 0 : index
    %400 = vector.load %arg9[%c0_74, %c0_75] : memref<8x4xf32, #tpu.memory_space<vmem>>, vector<8x4xf32>
    tpu.vector_store %arg9[%c0_74, %c0_75], %399 {strides = array<i32>} : memref<8x4xf32, #tpu.memory_space<vmem>>, vector<8x4xf32>,
    return
  }
}

</mosaic_0001>

<bundles_post_ra>
// kernel: model_forward.1
= control target key start
LH: loop header
LB: loop body
LE: loop exit
PB: predicated region body
PF: predicated region fallthrough
CT: control target
= control target key end

     0   :  { %vm89_vm0 = vcmask 130048   ;;  %v2543_v13 = vmov 0   ;;  %s2545_s17 = smov 32   ;;  %s2546_s18 = smov 96   ;;  %vm404_vm1 = vcmask 261120   ;;  %vm413_vm2 = vcmask 523264   ;;  %s3193_s1 = inlined_call_operand.vmem [shape: bf16[2,16,128], index: 1, kind: input, shape index: {}]   ;;  %s3194_s0 = inlined_call_operand.vmem [shape: bf16[64,16], index: 0, kind: input, shape index: {}]   ;;  %s3195_s3 = inlined_call_operand.vmem [shape: bf16[64,256], index: 3, kind: input, shape index: {}]   ;;  %s3196_s2 = inlined_call_operand.vmem [shape: f32[2,1,128], index: 2, kind: input, shape index: {}]   ;;  %s3197_s4 = inlined_call_operand.vmem [shape: bf16[2,64,128], index: 4, kind: input, shape index: {}]   ;;  %s3198_s6 = inlined_call_operand.vmem [shape: bf16[32,128], index: 6, kind: input, shape index: {}]   ;;  %s3199_s5 = inlined_call_operand.vmem [shape: f32[2,1,128], index: 5, kind: input, shape index: {}]   ;;  %s3200_s7 = inlined_call_operand.vmem [shape: f32[64,4], index: 7, kind: input, shape index: {}]   ;;  %s3201_s8 = inlined_call_operand.vmem [shape: f32[1,4], index: 8, kind: input, shape index: {}]   ;;  %s3202_s9 = inlined_call_operand.vmem [shape: f32[8,4], index: 9, kind: output, shape index: {}]  }
   0x1   :  { %v2347_v0 = vld [vmem:[%s3193_s1 + $0x8] sm:$0xff]   ;;  %v2348_v1 = vld [vmem:[%s3194_s0] sm:$0xff]   ;;  %v2351_v4 = vld [vmem:[%s3194_s0 + $0x10] sm:$0xff]   ;;  %vm422_vm3 = vcmask 785408   ;;  %vm2548_vm4 = vmmov 0   ;;  %vm2021_vm5 = vcmask 31744  }
   0x2   :  { %2187 = vmatprep.subr.bf16.mxu1 %v2347_v0  ;;  %v2349_v2 = vld [vmem:[%s3194_s0 + $0x8] sm:$0xff]   ;;  %2189 = vmatprep.mubr.msk.bf16.mxu1 %vm89_vm0, %v2348_v1  ;;  %v2350_v3 = vld [vmem:[%s3193_s1] sm:$0xff]   ;;  %v2633_v7 = vld [vmem:[%s3195_s3 + $0x14] ss:$8 sps:$4 sm:$0xff]  }
   0x3   :  { %2188 = vmatpush3.bf16.msra.mxu1 %v2347_v0  ;;  %2179 = vmatprep.mubr.msk.bf16.mxu0 %vm89_vm0, %v2348_v1  ;;  %v2621_v5 = vld [vmem:[%s3195_s3 + $0x4] ss:$8 sps:$4 sm:$0xff]   ;;  %v2627_v6 = vld [vmem:[%s3195_s3] ss:$8 sps:$4 sm:$0xff]   ;;  %v2352_v8 = vld [vmem:[%s3194_s0 + $0x18] sm:$0xff]  }
   0x4   :  { %2177 = vmatprep.subr.bf16.mxu0 %v2350_v3  ;;  %570 = vmatprep.subr.bf16.mxu1 %v2621_v5  ;;  %v2645_v9 = vld [vmem:[%s3195_s3 + $0x10] ss:$8 sps:$4 sm:$0xff]   ;;  %v2652_v10 = vld [vmem:[%s3195_s3 + $0x24] ss:$8 sps:$4 sm:$0xff]   ;;  %v2661_v11 = vld [vmem:[%s3195_s3 + $0x20] ss:$8 sps:$4 sm:$0xff]  }
   0x5   :  { %2178 = vmatpush3.bf16.msra.mxu0 %v2350_v3  ;;  %v2667_v12 = vld [vmem:[%s3195_s3 + $0x34] ss:$8 sps:$4 sm:$0xff]   ;;  %v2677_v14 = vld [vmem:[%s3195_s3 + $0x30] ss:$8 sps:$4 sm:$0xff]   ;;  %v2040_v15 = vld [vmem:[%s3196_s2 + $0x1] ss:$0 sm:$0xff] }
   0x6   :  { %2190 = vmatmul.mubr.msk.bf16.vlgmr.msra.gmra.mrb[0].mxu1 %vm89_vm0, %v2349_v2  ;;  %498 = vmatprep.subr.bf16.mxu0 %v2621_v5  ;;  %v2030_v19 = vld [vmem:[%s3196_s2] ss:$0 sm:$0xff]  ;;  %s2544_s2 = smov 64  }
   0x7   :  { %2193 = vmatprep.mubr.msk.bf16.mxu1 %vm89_vm0, %v2351_v4  ;;  %571 = vmatpush1.bf16.msra.mxu1 %v2627_v6 }
   0x8   :  { %2180 = vmatmul.mubr.msk.bf16.vlgmr.msra.gmra.mrb[0].mxu0 %vm89_vm0, %v2349_v2  ;;  %572 = vmatprep.subr.bf16.mxu1 %v2633_v7 }
   0x9   :  { %499 = vmatpush1.bf16.msra.mxu0 %v2627_v6  ;;  %2183 = vmatprep.mubr.msk.bf16.mxu0 %vm89_vm0, %v2351_v4 }
   0xa   :  { %500 = vmatprep.subr.bf16.mxu0 %v2633_v7 }
   0xb   :  { %573 = vmatpush1.bf16.msra.mxu1 %v2645_v9 }
   0xc   :  { %574 = vmatprep.subr.bf16.mxu1 %v2652_v10 }
   0xd   :  { %501 = vmatpush1.bf16.msra.mxu0 %v2645_v9 }
   0xe   :  { %2194 = vmatmul.mubr.msk.bf16.gmra.mrb[4].mxu1 %vm89_vm0, %v2352_v8  ;;  %502 = vmatprep.subr.bf16.mxu0 %v2652_v10 }
   0xf   :  { %602 = vmatprep.mubr.bf16.mxu1 %v2543_v13  ;;  %575 = vmatpush1.bf16.msra.mxu1 %v2661_v11 }
  0x10   :  { %2184 = vmatmul.mubr.msk.bf16.gmra.mrb[4].mxu0 %vm89_vm0, %v2352_v8  ;;  %576 = vmatprep.subr.bf16.mxu1 %v2667_v12 }
  0x11   :  { %503 = vmatpush1.bf16.msra.mxu0 %v2661_v11  ;;  %530 = vmatprep.mubr.bf16.mxu0 %v2543_v13 }
  0x12   :  { %504 = vmatprep.subr.bf16.mxu0 %v2667_v12 }
  0x13   :  { %577 = vmatpush1.bf16.msra.mxu1 %v2677_v14 }
  0x14   :  { %714 = vmatprep.subr.bf16.mxu1 %v2621_v5 }
  0x15   :  { %505 = vmatpush1.bf16.msra.mxu0 %v2677_v14 }
  0x16   :  { %642 = vmatprep.subr.bf16.mxu0 %v2621_v5 }
  0x18   :  { %531 = vmatmul.mubr.bf16.vlgmr.msra.gmra.mrb[8].mxu0 %v2543_v13 }
  0x19   :  { %643 = vmatpush1.bf16.msra.mxu0 %v2627_v6  ;;  %674 = vmatprep.mubr.bf16.mxu0 %v2543_v13 }
  0x1a   :  { %644 = vmatprep.subr.bf16.mxu0 %v2633_v7 }
  0x1d   :  { %645 = vmatpush1.bf16.msra.mxu0 %v2645_v9 }
  0x1e   :  { %646 = vmatprep.subr.bf16.mxu0 %v2652_v10 }
  0x21   :  { %647 = vmatpush1.bf16.msra.mxu0 %v2661_v11 }
  0x22   :  { %648 = vmatprep.subr.bf16.mxu0 %v2667_v12 }
  0x25   :  { %649 = vmatpush1.bf16.msra.mxu0 %v2677_v14 }
  0x26   :  { %786 = vmatprep.subr.bf16.mxu0 %v2621_v5 }
  0xd9   :  { %v2191_v16 = vpop.f32.mrb[0].mxu1 }
  0xda   :  { %v2699_v17 = vadd.f32 %v2191_v16, %v2040_v15  ;;  %v213_v18 = vpop.f32.mrb[1].mxu1 }
  0xdb   :  { %v2704_v20 = vadd.f32 %v2040_v15, %v213_v18  ;;  %v2192_v21 = vpop.f32.mrb[2].mxu1  ;;  %v2181_v24 = vpop.f32.mrb[0].mxu0 }
  0xdc   :  { %v2706_v22 = vadd.f32 %v2192_v21, %v2040_v15  ;;  %v216_v23 = vpop.f32.mrb[3].mxu1  ;;  %v2710_v26 = vadd.f32 %v2181_v24, %v2030_v19  ;;  %v136_v27 = vpop.f32.mrb[1].mxu0 }
  0xdd   :  { %v2708_v25 = vadd.f32 %v2040_v15, %v216_v23  ;;  %v2182_v28 = vpop.f32.mrb[2].mxu0  ;;  %v137_v43 = vadd.f32 %v2030_v19, %v136_v27 }
  0xde   :  { %v2712_v29 = vadd.f32 %v2182_v28, %v2030_v19  ;;  %v139_v30 = vpop.f32.mrb[3].mxu0 }
  0xdf   :  { %v2714_v31 = vadd.f32 %v2030_v19, %v139_v30 }
  0xe1   :  { %v2195_v32 = vpop.f32.mrb[4].mxu1 }
  0xe2   :  { %v2716_v33 = vadd.f32 %v2195_v32, %v2040_v15  ;;  %v229_v34 = vpop.f32.mrb[5].mxu1 }
  0xe3   :  { %v2718_v35 = vadd.f32 %v2040_v15, %v229_v34  ;;  %v2196_v36 = vpop.f32.mrb[6].mxu1  ;;  %v2185_v39 = vpop.f32.mrb[4].mxu0 }
  0xe4   :  { %v241_v37 = vadd.f32 %v2196_v36, %v2040_v15  ;;  %v232_v38 = vpop.f32.mrb[7].mxu1  ;;  %v2722_v41 = vadd.f32 %v2185_v39, %v2030_v19  ;;  %v152_v42 = vpop.f32.mrb[5].mxu0 }
  0xe5   :  { %v2720_v40 = vadd.f32 %v2040_v15, %v232_v38  ;;  %v2726_v44 = vadd.f32 %v2030_v19, %v152_v42  ;;  %v2186_v45 = vpop.f32.mrb[6].mxu0 }
  0xe6   :  { %308 = vrot.lane.b32.xlu1 %v241_v37, %s2544_s2  ;;  %252 = vrot.lane.b32.xlu0 %v241_v37, %s2545_s17  ;;  %v2728_v46 = vadd.f32 %v2186_v45, %v2030_v19  ;;  %v155_v47 = vpop.f32.mrb[7].mxu0 }
  0xe7   :  { %v2730_v48 = vadd.f32 %v2030_v19, %v155_v47 }
  0xea   :  { %332 = vrot.lane.b32.xlu1 %v137_v43, %s2544_s2  ;;  %284 = vrot.lane.b32.xlu0 %v137_v43, %s2545_s17 }
  0xeb   :  { %v532_v49 = vpop.f32.mrb[8].mxu0 }
  0xec   :  { %v534_v50 = vpop.f32.mrb[9].mxu0 }
  0xed   :  { %v536_v51 = vpop.f32.mrb[10].mxu0 }
  0xee   :  { %380 = vrot.lane.b32.xlu1 %v137_v43, %s2546_s18  ;;  %356 = vrot.lane.b32.xlu0 %v241_v37, %s2546_s18  ;;  %v537_v52 = vpop.f32.mrb[11].mxu0 }
 0x158   :  { %v309_v53 = vpop.permute.xlu1 %308  ;;  %v253_v54 = vpop.permute.xlu0 %252 }
 0x159   :  { %v405_v55 = vsel %vm404_vm1, %v137_v43, %v253_v54 }
 0x15c   :  { %v333_v56 = vpop.permute.xlu1 %332  ;;  %v285_v57 = vpop.permute.xlu0 %284 }
 0x15d   :  { %v414_v58 = vsel %vm413_vm2, %v405_v55, %v285_v57 }
 0x15e   :  { %v423_v59 = vsel %vm422_vm3, %v414_v58, %v309_v53 }
 0x15f   :  { %v539_v60 = vadd.f32 %v532_v49, %v423_v59 }
 0x160   :  { %v357_v61 = vpop.permute.xlu0 %356  ;;  %v381_v63 = vpop.permute.xlu1 %380 }
 0x161   :  { %v2054_v62 = vmul.f32 -1.442695, %v539_v60  ;;  %v431_v0 = vsel %vm404_vm1, %v333_v56, %v357_v61 }
 0x162   :  { %v439_v1 = vsel %vm413_vm2, %v431_v0, %v381_v63 }
 0x163   :  { %2375 = vpow2.f32 %v2054_v62  ;;  %v447_v2 = vsel %vm422_vm3, %v439_v1, %v241_v37 }
 0x164   :  { %v540_v3 = vadd.f32 %v534_v50, %v447_v2 }
 0x166   :  { %2377 = vtanh.f32 %v540_v3  ;;  %v2055_v19 = vmul.f32 -1.442695, %v540_v3 }
 0x16d   :  { %v2376_v4 = vpop.eup %2375 }
 0x16e   :  { %v547_v8 = vadd.f32 1.0, %v2376_v4 }
 0x170   :  { %2379 = vrcp.f32 %v547_v8  ;;  %v2378_v15 = vpop.eup %2377 }
 0x171   :  { %2381 = vpow2.f32 %v2055_v19 }
 0x17a   :  { %v2380_v16 = vpop.eup %2379 }
 0x17b   :  { %v555_v18 = vmul.f32 %v2380_v16, %v2378_v15  ;;  %v2382_v21 = vpop.eup %2381  ;;  %v554_v24 = vmul.f32 0.0, %v2380_v16 }
 0x17c   :  { %v548_v23 = vadd.f32 1.0, %v2382_v21 }
 0x17d   :  { %557 = vrot.lane.b32.xlu0 %v555_v18, %s2544_s2 }
 0x17e   :  { %2383 = vrcp.f32 %v548_v23 }
 0x181   :  { %254 = vrot.lane.b32.xlu0 %v2716_v33, %s2545_s17 }
 0x185   :  { %310 = vrot.lane.b32.xlu0 %v2716_v33, %s2544_s2 }
 0x188   :  { %v2384_v30 = vpop.eup %2383 }
 0x189   :  { %358 = vrot.lane.b32.xlu0 %v2716_v33, %s2546_s18 }
 0x1ef   :  { %v558_v27 = vpop.permute.xlu0 %557 }
 0x1f0   :  { %v560_v28 = vadd.f32 %v558_v27, %v554_v24 }
 0x1f2   :  { %2385 = vtanh.f32 %v560_v28 }
 0x1f3   :  { %v255_v38 = vpop.permute.xlu0 %254 }
 0x1f4   :  { %v406_v42 = vsel %vm404_vm1, %v2714_v31, %v255_v38 }
 0x1f7   :  { %v311_v45 = vpop.permute.xlu0 %310 }
 0x1fb   :  { %v359_v57 = vpop.permute.xlu0 %358 }
 0x1fc   :  { %v2386_v32 = vpop.eup %2385 }
 0x1fd   :  { %v2749_v34 = vmul.f32 %v2386_v32, %v2384_v30 }
 0x1ff   :  { %v563_v36 = vpack.c.bf16 %v2749_v34, %v2749_v34 }
 0x201   :  { %565 = vrot.lane.b32.xlu1 %v563_v36, %s2544_s2 }
 0x205   :  { %286 = vrot.lane.b32.xlu1 %v2714_v31, %s2545_s17 }
 0x209   :  { %334 = vrot.lane.b32.xlu1 %v2714_v31, %s2544_s2 }
 0x20d   :  { %382 = vrot.lane.b32.xlu1 %v2714_v31, %s2546_s18 }
 0x273   :  { %v566_v37 = vpop.permute.xlu1 %565 }
 0x274   :  { %2056 = vmatmul.mubr.msk.bf16.vlgmr.msra.gmra.mrb[8].mxu1 %vm413_vm2, %v566_v37 }
 0x275   :  { %715 = vmatpush1.bf16.msra.mxu1 %v2627_v6  ;;  %746 = vmatprep.mubr.bf16.mxu1 %v2543_v13 }
 0x276   :  { %716 = vmatprep.subr.bf16.mxu1 %v2633_v7 }
 0x277   :  { %v287_v39 = vpop.permute.xlu1 %286 }
 0x278   :  { %v415_v43 = vsel %vm413_vm2, %v406_v42, %v287_v39 }
 0x279   :  { %717 = vmatpush1.bf16.msra.mxu1 %v2645_v9  ;;  %v424_v49 = vsel %vm422_vm3, %v415_v43, %v311_v45 }
 0x27a   :  { %718 = vmatprep.subr.bf16.mxu1 %v2652_v10 }
 0x27b   :  { %v335_v47 = vpop.permute.xlu1 %334 }
 0x27c   :  { %v432_v58 = vsel %vm404_vm1, %v335_v47, %v359_v57 }
 0x27d   :  { %719 = vmatpush1.bf16.msra.mxu1 %v2661_v11 }
 0x27e   :  { %720 = vmatprep.subr.bf16.mxu1 %v2667_v12 }
 0x27f   :  { %v383_v56 = vpop.permute.xlu1 %382 }
 0x280   :  { %v440_v59 = vsel %vm413_vm2, %v432_v58, %v383_v56 }
 0x281   :  { %721 = vmatpush1.bf16.msra.mxu1 %v2677_v14  ;;  %v448_v31 = vsel %vm422_vm3, %v440_v59, %v2716_v33 }
 0x282   :  { %858 = vmatprep.subr.bf16.mxu1 %v2621_v5 }
 0x347   :  { %v604_v50 = vpop.f32.mrb[8].mxu1 }
 0x348   :  { %v611_v51 = vadd.f32 %v604_v50, %v424_v49  ;;  %v606_v52 = vpop.f32.mrb[9].mxu1 }
 0x349   :  { %v608_v53 = vpop.f32.mrb[10].mxu1  ;;  %v612_v60 = vadd.f32 %v606_v52, %v448_v31 }
 0x34a   :  { %v2057_v54 = vmul.f32 -1.442695, %v611_v51  ;;  %v609_v55 = vpop.f32.mrb[11].mxu1 }
 0x34b   :  { %v2058_v33 = vmul.f32 -1.442695, %v612_v60 }
 0x34c   :  { %2387 = vpow2.f32 %v2057_v54 }
 0x34d   :  { %2389 = vtanh.f32 %v612_v60 }
 0x356   :  { %v2388_v61 = vpop.eup %2387 }
 0x357   :  { %v619_v62 = vadd.f32 1.0, %v2388_v61  ;;  %v2390_v63 = vpop.eup %2389 }
 0x359   :  { %2391 = vrcp.f32 %v619_v62 }
 0x35a   :  { %2393 = vpow2.f32 %v2058_v33 }
 0x363   :  { %v2392_v0 = vpop.eup %2391 }
 0x364   :  { %v627_v1 = vmul.f32 %v2392_v0, %v2390_v63  ;;  %v2394_v2 = vpop.eup %2393  ;;  %v626_v4 = vmul.f32 %v2392_v0, %v560_v28 }
 0x365   :  { %v620_v3 = vadd.f32 1.0, %v2394_v2 }
 0x366   :  { %629 = vrot.lane.b32.xlu0 %v627_v1, %s2544_s2 }
 0x367   :  { %2395 = vrcp.f32 %v620_v3 }
 0x36a   :  { %256 = vrot.lane.b32.xlu0 %v2720_v40, %s2545_s17 }
 0x36e   :  { %312 = vrot.lane.b32.xlu0 %v2720_v40, %s2544_s2 }
 0x371   :  { %v2396_v16 = vpop.eup %2395 }
 0x372   :  { %360 = vrot.lane.b32.xlu0 %v2720_v40, %s2546_s18 }
 0x3d8   :  { %v630_v8 = vpop.permute.xlu0 %629 }
 0x3d9   :  { %v632_v15 = vadd.f32 %v630_v8, %v626_v4 }
 0x3db   :  { %2397 = vtanh.f32 %v632_v15 }
 0x3dc   :  { %v257_v24 = vpop.permute.xlu0 %256 }
 0x3dd   :  { %v407_v28 = vsel %vm404_vm1, %v2710_v26, %v257_v24 }
 0x3e0   :  { %v313_v32 = vpop.permute.xlu0 %312 }
 0x3e4   :  { %v361_v50 = vpop.permute.xlu0 %360 }
 0x3e5   :  { %v2398_v18 = vpop.eup %2397 }
 0x3e6   :  { %v2785_v19 = vmul.f32 %v2398_v18, %v2396_v16 }
 0x3e8   :  { %v635_v21 = vpack.c.bf16 %v2785_v19, %v2785_v19 }
 0x3ea   :  { %637 = vrot.lane.b32.xlu1 %v635_v21, %s2544_s2 }
 0x3ee   :  { %288 = vrot.lane.b32.xlu1 %v2710_v26, %s2545_s17 }
 0x3f2   :  { %336 = vrot.lane.b32.xlu1 %v2710_v26, %s2544_s2 }
 0x3f6   :  { %384 = vrot.lane.b32.xlu1 %v2710_v26, %s2546_s18 }
 0x45c   :  { %v638_v23 = vpop.permute.xlu1 %637 }
 0x45d   :  { %2059 = vmatmul.mubr.msk.bf16.vlgmr.msra.gmra.mrb[12].mxu0 %vm413_vm2, %v638_v23 }
 0x45e   :  { %787 = vmatpush1.bf16.msra.mxu0 %v2627_v6  ;;  %818 = vmatprep.mubr.bf16.mxu0 %v2543_v13 }
 0x45f   :  { %788 = vmatprep.subr.bf16.mxu0 %v2633_v7 }
 0x460   :  { %v289_v27 = vpop.permute.xlu1 %288 }
 0x461   :  { %v416_v30 = vsel %vm413_vm2, %v407_v28, %v289_v27 }
 0x462   :  { %789 = vmatpush1.bf16.msra.mxu0 %v2645_v9  ;;  %v425_v37 = vsel %vm422_vm3, %v416_v30, %v313_v32 }
 0x463   :  { %790 = vmatprep.subr.bf16.mxu0 %v2652_v10 }
 0x464   :  { %v337_v36 = vpop.permute.xlu1 %336 }
 0x465   :  { %v433_v51 = vsel %vm404_vm1, %v337_v36, %v361_v50 }
 0x466   :  { %791 = vmatpush1.bf16.msra.mxu0 %v2661_v11 }
 0x467   :  { %792 = vmatprep.subr.bf16.mxu0 %v2667_v12 }
 0x468   :  { %v385_v49 = vpop.permute.xlu1 %384 }
 0x469   :  { %v441_v52 = vsel %vm413_vm2, %v433_v51, %v385_v49 }
 0x46a   :  { %793 = vmatpush1.bf16.msra.mxu0 %v2677_v14  ;;  %v449_v26 = vsel %vm422_vm3, %v441_v52, %v2720_v40 }
 0x46b   :  { %930 = vmatprep.subr.bf16.mxu0 %v2621_v5 }
 0x530   :  { %v676_v38 = vpop.f32.mrb[12].mxu0 }
 0x531   :  { %v683_v39 = vadd.f32 %v676_v38, %v425_v37  ;;  %v678_v42 = vpop.f32.mrb[13].mxu0 }
 0x532   :  { %v680_v43 = vpop.f32.mrb[14].mxu0  ;;  %v684_v53 = vadd.f32 %v678_v42, %v449_v26 }
 0x533   :  { %v2060_v45 = vmul.f32 -1.442695, %v683_v39  ;;  %v681_v47 = vpop.f32.mrb[15].mxu0 }
 0x534   :  { %v2061_v40 = vmul.f32 -1.442695, %v684_v53 }
 0x535   :  { %2399 = vpow2.f32 %v2060_v45 }
 0x536   :  { %2401 = vtanh.f32 %v684_v53 }
 0x53f   :  { %v2400_v54 = vpop.eup %2399 }
 0x540   :  { %v691_v55 = vadd.f32 1.0, %v2400_v54  ;;  %v2402_v56 = vpop.eup %2401 }
 0x542   :  { %2403 = vrcp.f32 %v691_v55 }
 0x543   :  { %2405 = vpow2.f32 %v2061_v40 }
 0x54c   :  { %v2404_v57 = vpop.eup %2403 }
 0x54d   :  { %v699_v58 = vmul.f32 %v2404_v57, %v2402_v56  ;;  %v2406_v59 = vpop.eup %2405  ;;  %v698_v60 = vmul.f32 %v2404_v57, %v632_v15 }
 0x54e   :  { %v692_v31 = vadd.f32 1.0, %v2406_v59 }
 0x54f   :  { %701 = vrot.lane.b32.xlu0 %v699_v58, %s2544_s2 }
 0x550   :  { %2407 = vrcp.f32 %v692_v31 }
 0x553   :  { %258 = vrot.lane.b32.xlu0 %v2718_v35, %s2545_s17 }
 0x557   :  { %314 = vrot.lane.b32.xlu0 %v2718_v35, %s2544_s2 }
 0x55a   :  { %v2408_v63 = vpop.eup %2407 }
 0x55b   :  { %362 = vrot.lane.b32.xlu0 %v2718_v35, %s2546_s18 }
 0x5c1   :  { %v702_v61 = vpop.permute.xlu0 %701 }
 0x5c2   :  { %v704_v62 = vadd.f32 %v702_v61, %v698_v60 }
 0x5c4   :  { %2409 = vtanh.f32 %v704_v62 }
 0x5c5   :  { %v259_v3 = vpop.permute.xlu0 %258 }
 0x5c6   :  { %v408_v8 = vsel %vm404_vm1, %v2712_v29, %v259_v3 }
 0x5c9   :  { %v315_v16 = vpop.permute.xlu0 %314 }
 0x5ce   :  { %v2410_v0 = vpop.eup %2409 }
 0x5cf   :  { %v2821_v1 = vmul.f32 %v2410_v0, %v2408_v63 }
 0x5d1   :  { %v707_v33 = vpack.c.bf16 %v2821_v1, %v2821_v1 }
 0x5d3   :  { %709 = vrot.lane.b32.xlu1 %v707_v33, %s2544_s2 }
 0x5d7   :  { %290 = vrot.lane.b32.xlu1 %v2712_v29, %s2545_s17 }
 0x5db   :  { %338 = vrot.lane.b32.xlu1 %v2712_v29, %s2544_s2 }
 0x5df   :  { %386 = vrot.lane.b32.xlu1 %v2712_v29, %s2546_s18 }
 0x645   :  { %v710_v2 = vpop.permute.xlu1 %709 }
 0x646   :  { %2062 = vmatmul.mubr.msk.bf16.vlgmr.msra.gmra.mrb[12].mxu1 %vm413_vm2, %v710_v2 }
 0x647   :  { %859 = vmatpush1.bf16.msra.mxu1 %v2627_v6  ;;  %890 = vmatprep.mubr.bf16.mxu1 %v2543_v13 }
 0x648   :  { %860 = vmatprep.subr.bf16.mxu1 %v2633_v7 }
 0x649   :  { %v291_v4 = vpop.permute.xlu1 %290 }
 0x64a   :  { %v417_v15 = vsel %vm413_vm2, %v408_v8, %v291_v4 }
 0x64b   :  { %861 = vmatpush1.bf16.msra.mxu1 %v2645_v9  ;;  %v426_v21 = vsel %vm422_vm3, %v417_v15, %v315_v16 }
 0x64c   :  { %862 = vmatprep.subr.bf16.mxu1 %v2652_v10 }
 0x64d   :  { %v339_v18 = vpop.permute.xlu1 %338 }
 0x64f   :  { %863 = vmatpush1.bf16.msra.mxu1 %v2661_v11 }
 0x650   :  { %864 = vmatprep.subr.bf16.mxu1 %v2667_v12 }
 0x651   :  { %v387_v36 = vpop.permute.xlu1 %386 }
 0x653   :  { %865 = vmatpush1.bf16.msra.mxu1 %v2677_v14 }
 0x654   :  { %1002 = vmatprep.subr.bf16.mxu1 %v2621_v5  ;;  %v363_v5 = vpop.permute.xlu0 %362 }
 0x655   :  { %v434_v37 = vsel %vm404_vm1, %v339_v18, %v363_v5 }
 0x656   :  { %v442_v38 = vsel %vm413_vm2, %v434_v37, %v387_v36 }
 0x657   :  { %v450_v29 = vsel %vm422_vm3, %v442_v38, %v2718_v35 }
 0x719   :  { %v748_v23 = vpop.f32.mrb[12].mxu1 }
 0x71a   :  { %v755_v24 = vadd.f32 %v748_v23, %v426_v21  ;;  %v750_v27 = vpop.f32.mrb[13].mxu1 }
 0x71b   :  { %v752_v28 = vpop.f32.mrb[14].mxu1  ;;  %v756_v39 = vadd.f32 %v750_v27, %v450_v29 }
 0x71c   :  { %v2063_v30 = vmul.f32 -1.442695, %v755_v24  ;;  %v753_v32 = vpop.f32.mrb[15].mxu1 }
 0x71d   :  { %v2064_v35 = vmul.f32 -1.442695, %v756_v39 }
 0x71e   :  { %2411 = vpow2.f32 %v2063_v30 }
 0x71f   :  { %2413 = vtanh.f32 %v756_v39 }
 0x728   :  { %v2412_v42 = vpop.eup %2411 }
 0x729   :  { %v763_v43 = vadd.f32 1.0, %v2412_v42  ;;  %v2414_v45 = vpop.eup %2413 }
 0x72b   :  { %2415 = vrcp.f32 %v763_v43 }
 0x72c   :  { %2417 = vpow2.f32 %v2064_v35 }
 0x735   :  { %v2416_v47 = vpop.eup %2415 }
 0x736   :  { %v771_v49 = vmul.f32 %v2416_v47, %v2414_v45  ;;  %v2418_v50 = vpop.eup %2417  ;;  %v770_v52 = vmul.f32 %v2416_v47, %v704_v62 }
 0x737   :  { %v764_v51 = vadd.f32 1.0, %v2418_v50 }
 0x738   :  { %773 = vrot.lane.b32.xlu0 %v771_v49, %s2544_s2 }
 0x739   :  { %2419 = vrcp.f32 %v764_v51 }
 0x73c   :  { %260 = vrot.lane.b32.xlu0 %v2706_v22, %s2545_s17 }
 0x740   :  { %316 = vrot.lane.b32.xlu0 %v2706_v22, %s2544_s2 }
 0x743   :  { %v2420_v54 = vpop.eup %2419 }
 0x744   :  { %364 = vrot.lane.b32.xlu0 %v2706_v22, %s2546_s18 }
 0x7aa   :  { %v774_v26 = vpop.permute.xlu0 %773 }
 0x7ab   :  { %v776_v53 = vadd.f32 %v774_v26, %v770_v52 }
 0x7ad   :  { %2421 = vtanh.f32 %v776_v53 }
 0x7ae   :  { %v261_v40 = vpop.permute.xlu0 %260 }
 0x7af   :  { %v409_v31 = vsel %vm404_vm1, %v2726_v44, %v261_v40 }
 0x7b2   :  { %v317_v61 = vpop.permute.xlu0 %316 }
 0x7b6   :  { %v365_v16 = vpop.permute.xlu0 %364 }
 0x7b7   :  { %v2422_v55 = vpop.eup %2421 }
 0x7b8   :  { %v2857_v56 = vmul.f32 %v2422_v55, %v2420_v54 }
 0x7ba   :  { %v779_v57 = vpack.c.bf16 %v2857_v56, %v2857_v56 }
 0x7bc   :  { %781 = vrot.lane.b32.xlu1 %v779_v57, %s2544_s2 }
 0x7c0   :  { %292 = vrot.lane.b32.xlu1 %v2726_v44, %s2545_s17 }
 0x7c4   :  { %340 = vrot.lane.b32.xlu1 %v2726_v44, %s2544_s2 }
 0x7c8   :  { %388 = vrot.lane.b32.xlu1 %v2726_v44, %s2546_s18 }
 0x82e   :  { %v782_v58 = vpop.permute.xlu1 %781 }
 0x82f   :  { %2065 = vmatmul.mubr.msk.bf16.vlgmr.msra.gmra.mrb[16].mxu0 %vm413_vm2, %v782_v58 }
 0x830   :  { %931 = vmatpush1.bf16.msra.mxu0 %v2627_v6  ;;  %962 = vmatprep.mubr.bf16.mxu0 %v2543_v13 }
 0x831   :  { %932 = vmatprep.subr.bf16.mxu0 %v2633_v7 }
 0x832   :  { %v293_v59 = vpop.permute.xlu1 %292 }
 0x833   :  { %v418_v60 = vsel %vm413_vm2, %v409_v31, %v293_v59 }
 0x834   :  { %933 = vmatpush1.bf16.msra.mxu0 %v2645_v9  ;;  %v427_v63 = vsel %vm422_vm3, %v418_v60, %v317_v61 }
 0x835   :  { %934 = vmatprep.subr.bf16.mxu0 %v2652_v10 }
 0x836   :  { %v341_v62 = vpop.permute.xlu1 %340 }
 0x837   :  { %v435_v18 = vsel %vm404_vm1, %v341_v62, %v365_v16 }
 0x838   :  { %935 = vmatpush1.bf16.msra.mxu0 %v2661_v11 }
 0x839   :  { %936 = vmatprep.subr.bf16.mxu0 %v2667_v12 }
 0x83a   :  { %v389_v15 = vpop.permute.xlu1 %388 }
 0x83b   :  { %v443_v21 = vsel %vm413_vm2, %v435_v18, %v389_v15 }
 0x83c   :  { %937 = vmatpush1.bf16.msra.mxu0 %v2677_v14  ;;  %v451_v44 = vsel %vm422_vm3, %v443_v21, %v2706_v22 }
 0x902   :  { %v820_v0 = vpop.f32.mrb[16].mxu0 }
 0x903   :  { %v827_v33 = vadd.f32 %v820_v0, %v427_v63  ;;  %v822_v2 = vpop.f32.mrb[17].mxu0 }
 0x904   :  { %v824_v3 = vpop.f32.mrb[18].mxu0  ;;  %v828_v23 = vadd.f32 %v822_v2, %v451_v44 }
 0x905   :  { %v2066_v4 = vmul.f32 -1.442695, %v827_v33  ;;  %v825_v8 = vpop.f32.mrb[19].mxu0 }
 0x906   :  { %v2067_v22 = vmul.f32 -1.442695, %v828_v23 }
 0x907   :  { %2423 = vpow2.f32 %v2066_v4 }
 0x908   :  { %2425 = vtanh.f32 %v828_v23 }
 0x911   :  { %v2424_v24 = vpop.eup %2423 }
 0x912   :  { %v835_v27 = vadd.f32 1.0, %v2424_v24  ;;  %v2426_v28 = vpop.eup %2425 }
 0x914   :  { %2427 = vrcp.f32 %v835_v27 }
 0x915   :  { %2429 = vpow2.f32 %v2067_v22 }
 0x91e   :  { %v2428_v30 = vpop.eup %2427 }
 0x91f   :  { %v843_v32 = vmul.f32 %v2428_v30, %v2426_v28  ;;  %v2430_v36 = vpop.eup %2429  ;;  %v842_v37 = vmul.f32 %v2428_v30, %v776_v53 }
 0x920   :  { %v836_v5 = vadd.f32 1.0, %v2430_v36 }
 0x921   :  { %845 = vrot.lane.b32.xlu0 %v843_v32, %s2544_s2 }
 0x922   :  { %2431 = vrcp.f32 %v836_v5 }
 0x925   :  { %262 = vrot.lane.b32.xlu0 %v2699_v17, %s2545_s17 }
 0x929   :  { %318 = vrot.lane.b32.xlu0 %v2699_v17, %s2544_s2 }
 0x92c   :  { %v2432_v39 = vpop.eup %2431 }
 0x92d   :  { %366 = vrot.lane.b32.xlu0 %v2699_v17, %s2546_s18 }
 0x993   :  { %v846_v38 = vpop.permute.xlu0 %845 }
 0x994   :  { %v848_v29 = vadd.f32 %v846_v38, %v842_v37 }
 0x996   :  { %2433 = vtanh.f32 %v848_v29 }
 0x997   :  { %v263_v49 = vpop.permute.xlu0 %262 }
 0x998   :  { %v410_v50 = vsel %vm404_vm1, %v2730_v48, %v263_v49 }
 0x99b   :  { %v319_v51 = vpop.permute.xlu0 %318 }
 0x9a0   :  { %v2434_v42 = vpop.eup %2433 }
 0x9a1   :  { %v2892_v43 = vmul.f32 %v2434_v42, %v2432_v39 }
 0x9a3   :  { %v851_v45 = vpack.c.bf16 %v2892_v43, %v2892_v43 }
 0x9a5   :  { %853 = vrot.lane.b32.xlu1 %v851_v45, %s2544_s2 }
 0x9a9   :  { %294 = vrot.lane.b32.xlu1 %v2730_v48, %s2545_s17 }
 0x9ad   :  { %342 = vrot.lane.b32.xlu1 %v2730_v48, %s2544_s2 }
 0x9b1   :  { %390 = vrot.lane.b32.xlu1 %v2730_v48, %s2546_s18 }
 0xa17   :  { %v854_v47 = vpop.permute.xlu1 %853 }
 0xa18   :  { %2068 = vmatmul.mubr.msk.bf16.vlgmr.msra.gmra.mrb[16].mxu1 %vm413_vm2, %v854_v47 }
 0xa19   :  { %1003 = vmatpush1.bf16.msra.mxu1 %v2627_v6  ;;  %1034 = vmatprep.mubr.bf16.mxu1 %v2543_v13 }
 0xa1a   :  { %1004 = vmatprep.subr.bf16.mxu1 %v2633_v7 }
 0xa1b   :  { %v295_v35 = vpop.permute.xlu1 %294 }
 0xa1c   :  { %v419_v6 = vsel %vm413_vm2, %v410_v50, %v295_v35 }
 0xa1d   :  { %1005 = vmatpush1.bf16.msra.mxu1 %v2645_v9  ;;  %v428_v7 = vsel %vm422_vm3, %v419_v6, %v319_v51 }
 0xa1e   :  { %1006 = vmatprep.subr.bf16.mxu1 %v2652_v10 }
 0xa1f   :  { %v343_v52 = vpop.permute.xlu1 %342 }
 0xa21   :  { %1007 = vmatpush1.bf16.msra.mxu1 %v2661_v11 }
 0xa22   :  { %1008 = vmatprep.subr.bf16.mxu1 %v2667_v12 }
 0xa23   :  { %v391_v12 = vpop.permute.xlu1 %390 }
 0xa25   :  { %1009 = vmatpush1.bf16.msra.mxu1 %v2677_v14  ;;  %v367_v14 = vpop.permute.xlu0 %366 }
 0xa26   :  { %v436_v55 = vsel %vm404_vm1, %v343_v52, %v367_v14  ;;  %v2332_v14 = vpack.i.bf16 %v2857_v56, %v2821_v1 }
 0xa27   :  { %v444_v57 = vsel %vm413_vm2, %v436_v55, %v391_v12  ;;  %v2327_v12 = vpack.i.bf16 %v2785_v19, %v2749_v34 }
 0xa28   :  { %v452_v48 = vsel %vm422_vm3, %v444_v57, %v2699_v17 }
 0xaeb   :  { %v892_v9 = vpop.f32.mrb[16].mxu1 }
 0xaec   :  { %v899_v26 = vadd.f32 %v892_v9, %v428_v7  ;;  %v894_v10 = vpop.f32.mrb[17].mxu1 }
 0xaed   :  { %v896_v53 = vpop.f32.mrb[18].mxu1  ;;  %v900_v58 = vadd.f32 %v894_v10, %v452_v48 }
 0xaee   :  { %v2069_v11 = vmul.f32 -1.442695, %v899_v26  ;;  %v897_v54 = vpop.f32.mrb[19].mxu1 }
 0xaef   :  { %v2070_v17 = vmul.f32 -1.442695, %v900_v58 }
 0xaf0   :  { %2435 = vpow2.f32 %v2069_v11 }
 0xaf1   :  { %2437 = vtanh.f32 %v900_v58 }
 0xafa   :  { %v2436_v40 = vpop.eup %2435 }
 0xafb   :  { %v907_v59 = vadd.f32 1.0, %v2436_v40  ;;  %v2438_v31 = vpop.eup %2437 }
 0xafd   :  { %2439 = vrcp.f32 %v907_v59 }
 0xafe   :  { %2441 = vpow2.f32 %v2070_v17 }
 0xb07   :  { %v2440_v60 = vpop.eup %2439 }
 0xb08   :  { %v915_v61 = vmul.f32 %v2440_v60, %v2438_v31  ;;  %v2442_v62 = vpop.eup %2441  ;;  %v914_v0 = vmul.f32 %v2440_v60, %v848_v29 }
 0xb09   :  { %v908_v63 = vadd.f32 1.0, %v2442_v62 }
 0xb0a   :  { %917 = vrot.lane.b32.xlu0 %v915_v61, %s2544_s2 }
 0xb0b   :  { %2443 = vrcp.f32 %v908_v63 }
 0xb0e   :  { %264 = vrot.lane.b32.xlu0 %v2708_v25, %s2545_s17 }
 0xb12   :  { %320 = vrot.lane.b32.xlu0 %v2708_v25, %s2544_s2 }
 0xb15   :  { %v2444_v3 = vpop.eup %2443 }
 0xb16   :  { %368 = vrot.lane.b32.xlu0 %v2708_v25, %s2546_s18 }
 0xb7c   :  { %v918_v33 = vpop.permute.xlu0 %917 }
 0xb7d   :  { %v920_v2 = vadd.f32 %v918_v33, %v914_v0 }
 0xb7f   :  { %2445 = vtanh.f32 %v920_v2 }
 0xb80   :  { %v265_v18 = vpop.permute.xlu0 %264 }
 0xb81   :  { %v411_v44 = vsel %vm404_vm1, %v2722_v41, %v265_v18 }
 0xb84   :  { %v321_v24 = vpop.permute.xlu0 %320 }
 0xb88   :  { %v369_v29 = vpop.permute.xlu0 %368 }
 0xb89   :  { %v2446_v4 = vpop.eup %2445 }
 0xb8a   :  { %v2927_v8 = vmul.f32 %v2446_v4, %v2444_v3 }
 0xb8c   :  { %v923_v15 = vpack.c.bf16 %v2927_v8, %v2927_v8 }
 0xb8e   :  { %925 = vrot.lane.b32.xlu1 %v923_v15, %s2544_s2 }
 0xb92   :  { %296 = vrot.lane.b32.xlu1 %v2722_v41, %s2545_s17 }
 0xb96   :  { %344 = vrot.lane.b32.xlu1 %v2722_v41, %s2544_s2 }
 0xb9a   :  { %392 = vrot.lane.b32.xlu1 %v2722_v41, %s2546_s18 }
 0xc00   :  { %v926_v16 = vpop.permute.xlu1 %925 }
 0xc01   :  { %2071 = vmatmul.mubr.msk.bf16.vlgmr.msra.gmra.mrb[20].mxu0 %vm413_vm2, %v926_v16 }
 0xc04   :  { %v297_v21 = vpop.permute.xlu1 %296 }
 0xc05   :  { %v420_v23 = vsel %vm413_vm2, %v411_v44, %v297_v21  ;;  %v2365_v21 = vld [vmem:[%s3197_s4] sm:$0xff]   ;;  %v2366_v44 = vld [vmem:[%s3197_s4 + $0x8] sm:$0xff]  }
 0xc06   :  { %v429_v28 = vsel %vm422_vm3, %v420_v23, %v321_v24  ;;  %2197 = vmatprep.subr.bf16.mxu0 %v2365_v21 }
 0xc07   :  { %2198 = vmatpush3.bf16.msra.mxu0 %v2365_v21 }
 0xc08   :  { %v345_v27 = vpop.permute.xlu1 %344  ;;  %2199 = vmatprep.subr.bf16.mxu0 %v2366_v44 }
 0xc09   :  { %v437_v39 = vsel %vm404_vm1, %v345_v27, %v369_v29 }
 0xc0b   :  { %2200 = vmatpush3.bf16.msra.mxu0 %v2366_v44 }
 0xc0c   :  { %v393_v38 = vpop.permute.xlu1 %392 }
 0xc0d   :  { %v445_v42 = vsel %vm413_vm2, %v437_v39, %v393_v38 }
 0xc0e   :  { %v453_v41 = vsel %vm422_vm3, %v445_v42, %v2708_v25 }
 0xcd4   :  { %v964_v30 = vpop.f32.mrb[20].mxu0 }
 0xcd5   :  { %v971_v32 = vadd.f32 %v964_v30, %v429_v28  ;;  %v966_v22 = vpop.f32.mrb[21].mxu0 }
 0xcd6   :  { %v968_v36 = vpop.f32.mrb[22].mxu0  ;;  %v972_v45 = vadd.f32 %v966_v22, %v453_v41  ;;  %v2993_v22 = vld [vmem:[%s3198_s6] sm:$0xff]   ;;  %v2342_v41 = vpack.i.bf16 %v2927_v8, %v2892_v43 }
 0xcd7   :  { %v2072_v5 = vmul.f32 -1.442695, %v971_v32  ;;  %v969_v37 = vpop.f32.mrb[23].mxu0  ;;  %v2367_v32 = vld [vmem:[%s3197_s4 + $0x10] sm:$0xff]   ;;  %v2547_v36 = vmov 0.0  }
 0xcd8   :  { %v2073_v25 = vmul.f32 -1.442695, %v972_v45  ;;  %2201 = vmatprep.subr.bf16.mxu0 %v2367_v32  ;;  %2213 = vmatprep.subr.bf16.mxu1 %v2547_v36  ;;  %v3004_v37 = vld [vmem:[%s3198_s6 + $0x8] sm:$0xff]  }
 0xcd9   :  { %2447 = vpow2.f32 %v2072_v5  ;;  %2202 = vmatpush3.bf16.msra.mxu0 %v2367_v32  ;;  %v2369_v5 = vld [vmem:[%s3197_s4 + $0x18] sm:$0xff]  }
 0xcda   :  { %2449 = vtanh.f32 %v972_v45  ;;  %2203 = vmatprep.subr.bf16.mxu0 %v2369_v5 }
 0xcdd   :  { %2204 = vmatpush3.bf16.msra.mxu0 %v2369_v5 }
 0xcde   :  { %2237 = vmatprep.subr.bf16.mxu0 %v2547_v36 }
 0xce3   :  { %v2448_v47 = vpop.eup %2447 }
 0xce4   :  { %v979_v49 = vadd.f32 1.0, %v2448_v47  ;;  %v2450_v35 = vpop.eup %2449 }
 0xce6   :  { %2451 = vrcp.f32 %v979_v49 }
 0xce7   :  { %2453 = vpow2.f32 %v2073_v25 }
 0xcf0   :  { %v2452_v50 = vpop.eup %2451 }
 0xcf1   :  { %v987_v6 = vmul.f32 %v2452_v50, %v2450_v35  ;;  %v2454_v51 = vpop.eup %2453  ;;  %v986_v7 = vmul.f32 %v2452_v50, %v920_v2 }
 0xcf2   :  { %v980_v52 = vadd.f32 1.0, %v2454_v51 }
 0xcf3   :  { %989 = vrot.lane.b32.xlu0 %v987_v6, %s2544_s2 }
 0xcf4   :  { %2455 = vrcp.f32 %v980_v52 }
 0xcf7   :  { %266 = vrot.lane.b32.xlu0 %v2704_v20, %s2545_s17 }
 0xcfb   :  { %322 = vrot.lane.b32.xlu0 %v2704_v20, %s2544_s2 }
 0xcfe   :  { %v2456_v10 = vpop.eup %2455 }
 0xcff   :  { %370 = vrot.lane.b32.xlu0 %v2704_v20, %s2546_s18 }
 0xd65   :  { %v990_v9 = vpop.permute.xlu0 %989 }
 0xd66   :  { %v992_v26 = vadd.f32 %v990_v9, %v986_v7 }
 0xd68   :  { %2457 = vtanh.f32 %v992_v26 }
 0xd69   :  { %v267_v57 = vpop.permute.xlu0 %266 }
 0xd6a   :  { %v412_v58 = vsel %vm404_vm1, %v2728_v46, %v267_v57 }
 0xd6d   :  { %v323_v59 = vpop.permute.xlu0 %322 }
 0xd71   :  { %v371_v63 = vpop.permute.xlu0 %370 }
 0xd72   :  { %v2458_v53 = vpop.eup %2457 }
 0xd73   :  { %v2954_v11 = vmul.f32 %v2458_v53, %v2456_v10 }
 0xd75   :  { %v995_v54 = vpack.c.bf16 %v2954_v11, %v2954_v11 }
 0xd77   :  { %997 = vrot.lane.b32.xlu1 %v995_v54, %s2544_s2 }
 0xd7b   :  { %298 = vrot.lane.b32.xlu1 %v2728_v46, %s2545_s17 }
 0xd7f   :  { %346 = vrot.lane.b32.xlu1 %v2728_v46, %s2544_s2 }
 0xd83   :  { %394 = vrot.lane.b32.xlu1 %v2728_v46, %s2546_s18 }
 0xd87   :  { %2328 = vrot.lane.b32.xlu1 %v2327_v12, %s2544_s2 }
 0xd8b   :  { %2333 = vrot.lane.b32.xlu1 %v2332_v14, %s2544_s2 }
 0xde9   :  { %v998_v55 = vpop.permute.xlu1 %997 }
 0xdea   :  { %2074 = vmatmul.mubr.msk.bf16.vlgmr.msra.gmra.mrb[20].mxu1 %vm413_vm2, %v998_v55 }
 0xdeb   :  { %2214 = vmatpush3.bf16.msra.mxu1 %v2993_v22  ;;  %2217 = vmatprep.mubr.msk.bf16.mxu1 %vm2548_vm4, %v2547_v36 }
 0xdec   :  { %2215 = vmatprep.subr.bf16.mxu1 %v2547_v36 }
 0xded   :  { %v299_v48 = vpop.permute.xlu1 %298 }
 0xdee   :  { %v421_v40 = vsel %vm413_vm2, %v412_v58, %v299_v48 }
 0xdef   :  { %v430_v34 = vsel %vm422_vm3, %v421_v40, %v323_v59  ;;  %2216 = vmatpush3.bf16.msra.mxu1 %v3004_v37 }
 0xdf0   :  { %2221 = vmatprep.subr.bf16.mxu1 %v2547_v36 }
 0xdf1   :  { %v347_v31 = vpop.permute.xlu1 %346 }
 0xdf2   :  { %v438_v0 = vsel %vm404_vm1, %v347_v31, %v371_v63  ;;  %2218 = vmatmul.mubr.bf16.vlgmr.msra.gmra.mrb[24].mxu1 %v2543_v13 }
 0xdf3   :  { %2222 = vmatpush3.bf16.msra.mxu1 %v2993_v22  ;;  %2225 = vmatprep.mubr.msk.bf16.mxu1 %vm2548_vm4, %v2547_v36 }
 0xdf4   :  { %2223 = vmatprep.subr.bf16.mxu1 %v2547_v36 }
 0xdf5   :  { %v395_v62 = vpop.permute.xlu1 %394 }
 0xdf6   :  { %v446_v33 = vsel %vm413_vm2, %v438_v0, %v395_v62 }
 0xdf7   :  { %v454_v46 = vsel %vm422_vm3, %v446_v33, %v2704_v20  ;;  %2224 = vmatpush3.bf16.msra.mxu1 %v3004_v37 }
 0xdf8   :  { %2229 = vmatprep.subr.bf16.mxu1 %v2547_v36 }
 0xdf9   :  { %v2329_v13 = vpop.permute.xlu1 %2328 }
 0xdfa   :  { %v2331_v47 = vunpack.i.h.bf16 %v2329_v13  ;;  %v2330_v49 = vunpack.i.l.bf16 %v2329_v13 }
 0xdfd   :  { %v2334_v6 = vpop.permute.xlu1 %2333 }
 0xdfe   :  { %v2336_v9 = vunpack.i.h.bf16 %v2334_v6 }
 0xebd   :  { %v1036_v19 = vpop.f32.mrb[20].mxu1 }
 0xebe   :  { %v1043_v60 = vadd.f32 %v1036_v19, %v430_v34  ;;  %v1038_v61 = vpop.f32.mrb[21].mxu1  ;;  %v2086_v34 = vld [vmem:[%s3199_s5] ss:$0 sm:$0xff] }
 0xebf   :  { %v1040_v1 = vpop.f32.mrb[22].mxu1  ;;  %v1044_v2 = vadd.f32 %v1038_v61, %v454_v46 }
 0xec0   :  { %v2075_v56 = vmul.f32 -1.442695, %v1043_v60  ;;  %v1041_v17 = vpop.f32.mrb[23].mxu1 }
 0xec1   :  { %v2076_v20 = vmul.f32 -1.442695, %v1044_v2 }
 0xec2   :  { %2459 = vpow2.f32 %v2075_v56 }
 0xec3   :  { %2461 = vtanh.f32 %v1044_v2 }
 0xec5   :  { %v1290_v58 = vpop.f32.mrb[24].mxu1 }
 0xec6   :  { %v2219_v40 = vpop.f32.mrb[25].mxu1 }
 0xec7   :  { %v1293_v59 = vpop.f32.mrb[26].mxu1 }
 0xec8   :  { %v2220_v31 = vpop.f32.mrb[27].mxu1 }
 0xecc   :  { %v2460_v3 = vpop.eup %2459 }
 0xecd   :  { %v1051_v4 = vadd.f32 1.0, %v2460_v3  ;;  %v2462_v15 = vpop.eup %2461 }
 0xecf   :  { %2463 = vrcp.f32 %v1051_v4 }
 0xed0   :  { %2465 = vpow2.f32 %v2076_v20 }
 0xed9   :  { %v2464_v16 = vpop.eup %2463 }
 0xeda   :  { %v1059_v18 = vmul.f32 %v2464_v16, %v2462_v15  ;;  %v2466_v23 = vpop.eup %2465  ;;  %v1058_v27 = vmul.f32 %v2464_v16, %v992_v26  ;;  %v2335_v26 = vunpack.i.l.bf16 %v2334_v6 }
 0xedb   :  { %v1052_v24 = vadd.f32 1.0, %v2466_v23 }
 0xedc   :  { %1061 = vrot.lane.b32.xlu0 %v1059_v18, %s2544_s2 }
 0xedd   :  { %2467 = vrcp.f32 %v1052_v24 }
 0xee7   :  { %v2468_v38 = vpop.eup %2467 }
 0xf4e   :  { %v1062_v28 = vpop.permute.xlu0 %1061 }
 0xf4f   :  { %v1064_v30 = vadd.f32 %v1062_v28, %v1058_v27 }
 0xf51   :  { %2469 = vtanh.f32 %v1064_v30 }
 0xf5b   :  { %v2470_v29 = vpop.eup %2469 }
 0xf5c   :  { %v1066_v39 = vmul.f32 %v2470_v29, %v2468_v38 }
 0xf5e   :  { %v2337_v42 = vpack.i.bf16 %v1066_v39, %v2954_v11 }
 0xf60   :  { %2338 = vrot.lane.b32.xlu0 %v2337_v42, %s2544_s2 }
 0xf64   :  { %2343 = vrot.lane.b32.xlu0 %v2342_v41, %s2544_s2 }
 0xfd2   :  { %v2339_v45 = vpop.permute.xlu0 %2338 }
 0xfd3   :  { %v2341_v35 = vunpack.i.h.bf16 %v2339_v45  ;;  %v2340_v50 = vunpack.i.l.bf16 %v2339_v45 }
 0xfd5   :  { %v1099_v25 = vsel %vm404_vm1, %v2330_v49, %v2341_v35  ;;  %v1100_v51 = vsel %vm404_vm1, %v2331_v47, %v2340_v50  ;;  %v1105_v55 = vsel %vm404_vm1, %v2340_v50, %v2331_v47  ;;  %v1106_v57 = vsel %vm404_vm1, %v2341_v35, %v2330_v49 }
 0xfd6   :  { %v1107_v52 = vpack.c.bf16 %v1100_v51, %v1099_v25  ;;  %v2344_v7 = vpop.permute.xlu0 %2343  ;;  %v3037_v48 = vpack.c.bf16 %v1106_v57, %v1105_v55 }
 0xfd7   :  { %v2346_v43 = vunpack.i.h.bf16 %v2344_v7  ;;  %v2345_v8 = vunpack.i.l.bf16 %v2344_v7 }
 0xfd8   :  { %2205 = vmatprep.mubr.msk.bf16.mxu0 %vm413_vm2, %v1107_v52 }
 0xfd9   :  { %v1101_v10 = vsel %vm404_vm1, %v2335_v26, %v2346_v43  ;;  %v1102_v53 = vsel %vm404_vm1, %v2336_v9, %v2345_v8  ;;  %v1103_v11 = vsel %vm404_vm1, %v2345_v8, %v2336_v9  ;;  %v1104_v54 = vsel %vm404_vm1, %v2346_v43, %v2335_v26 }
 0xfda   :  { %v1108_v12 = vpack.c.bf16 %v1102_v53, %v1101_v10  ;;  %v1109_v14 = vpack.c.bf16 %v1104_v54, %v1103_v11 }
 0xfdc   :  { %2206 = vmatmul.mubr.msk.bf16.vlgmr.msra.gmra.mrb[24].mxu0 %vm413_vm2, %v1108_v12 }
 0xfdd   :  { %2209 = vmatprep.mubr.msk.bf16.mxu0 %vm413_vm2, %v1109_v14  ;;  %2238 = vmatpush3.bf16.msra.mxu0 %v2993_v22 }
 0xfde   :  { %2239 = vmatprep.subr.bf16.mxu0 %v2547_v36 }
 0xfe1   :  { %2240 = vmatpush3.bf16.msra.mxu0 %v3004_v37 }
 0xfe2   :  { %2253 = vmatprep.subr.bf16.mxu0 %v2547_v36 }
 0xfe4   :  { %2210 = vmatmul.mubr.msk.bf16.gmra.mrb[28].mxu0 %vm413_vm2, %v3037_v48 }
 0xfe5   :  { %2241 = vmatprep.mubr.msk.bf16.mxu0 %vm2548_vm4, %v2547_v36 }
0x10af   :  { %v2207_v19 = vpop.f32.mrb[24].mxu0 }
0x10b0   :  { %v3047_v60 = vadd.f32 %v2207_v19, %v2086_v34  ;;  %v1211_v61 = vpop.f32.mrb[25].mxu0 }
0x10b1   :  { %v1212_v1 = vadd.f32 %v2086_v34, %v1211_v61  ;;  %v2208_v56 = vpop.f32.mrb[26].mxu0 }
0x10b2   :  { %v3049_v17 = vadd.f32 %v2208_v56, %v2086_v34  ;;  %v1214_v62 = vpop.f32.mrb[27].mxu0 }
0x10b3   :  { %v1296_v63 = vadd.f32 %v1290_v58, %v1212_v1  ;;  %v1215_v0 = vadd.f32 %v2086_v34, %v1214_v62 }
0x10b5   :  { %2471 = vtanh.f32 %v1296_v63  ;;  %v2097_v44 = vmul.f32 -1.442695, %v1296_v63 }
0x10b7   :  { %v2211_v33 = vpop.f32.mrb[28].mxu0  ;;  %2473 = vpow2.f32 %v2097_v44 }
0x10b8   :  { %v3051_v46 = vadd.f32 %v2211_v33, %v2086_v34  ;;  %v1227_v2 = vpop.f32.mrb[29].mxu0 }
0x10b9   :  { %v3053_v3 = vadd.f32 %v2086_v34, %v1227_v2  ;;  %v2212_v4 = vpop.f32.mrb[30].mxu0 }
0x10ba   :  { %v3055_v15 = vadd.f32 %v2212_v4, %v2086_v34  ;;  %v1230_v16 = vpop.f32.mrb[31].mxu0 }
0x10bb   :  { %v3057_v18 = vadd.f32 %v2086_v34, %v1230_v16 }
0x10bf   :  { %v2472_v21 = vpop.eup %2471 }
0x10c0   :  { %1306 = vrot.lane.b32.xlu1 %v2472_v21, %s2544_s2 }
0x10c1   :  { %v2474_v20 = vpop.eup %2473 }
0x10c2   :  { %v1300_v23 = vadd.f32 1.0, %v2474_v20 }
0x10c4   :  { %2475 = vrcp.f32 %v1300_v23 }
0x10ce   :  { %v2476_v24 = vpop.eup %2475 }
0x10cf   :  { %v1304_v30 = vmul.f32 0.0, %v2476_v24 }
0x1132   :  { %v1307_v27 = vpop.permute.xlu1 %1306 }
0x1133   :  { %v1309_v28 = vmul.f32 %v2476_v24, %v1307_v27 }
0x1135   :  { %1311 = vrot.lane.b32.xlu0 %v1309_v28, %s2545_s17 }
0x11a7   :  { %v1312_v32 = vpop.permute.xlu0 %1311 }
0x11a8   :  { %v1314_v5 = vadd.f32 %v1312_v32, %v1304_v30 }
0x11aa   :  { %2477 = vtanh.f32 %v1314_v5 }
0x11b4   :  { %v2478_v38 = vpop.eup %2477 }
0x11b5   :  { %1317 = vrot.lane.b32.xlu1 %v2478_v38, %s2544_s2 }
0x1227   :  { %v1318_v29 = vpop.permute.xlu1 %1317 }
0x1228   :  { %v1320_v39 = vmul.f32 %v2476_v24, %v1318_v29 }
0x122a   :  { %v1321_v42 = vpack.c.bf16 %v1320_v39, %v1320_v39 }
0x122c   :  { %1323 = vrot.lane.b32.xlu0 %v1321_v42, %s2545_s17 }
0x129e   :  { %v1324_v41 = vpop.permute.xlu0 %1323 }
0x129f   :  { %2226 = vmatmul.mubr.msk.bf16.vlgmr.msra.gmra.mrb[28].mxu1 %vm404_vm1, %v1324_v41 }
0x12a0   :  { %2230 = vmatpush3.bf16.msra.mxu1 %v2993_v22  ;;  %2233 = vmatprep.mubr.msk.bf16.mxu1 %vm2548_vm4, %v2547_v36 }
0x12a1   :  { %2231 = vmatprep.subr.bf16.mxu1 %v2547_v36 }
0x12a4   :  { %2232 = vmatpush3.bf16.msra.mxu1 %v3004_v37 }
0x12a5   :  { %2245 = vmatprep.subr.bf16.mxu1 %v2547_v36 }
0x1372   :  { %v1362_v13 = vpop.f32.mrb[28].mxu1 }
0x1373   :  { %v1368_v45 = vadd.f32 %v1362_v13, %v1215_v0  ;;  %v2227_v47 = vpop.f32.mrb[29].mxu1 }
0x1374   :  { %v1365_v49 = vpop.f32.mrb[30].mxu1 }
0x1375   :  { %2479 = vtanh.f32 %v1368_v45  ;;  %v2228_v35 = vpop.f32.mrb[31].mxu1  ;;  %v2099_v6 = vmul.f32 -1.442695, %v1368_v45 }
0x1377   :  { %2481 = vpow2.f32 %v2099_v6 }
0x137f   :  { %v2480_v50 = vpop.eup %2479 }
0x1380   :  { %1378 = vrot.lane.b32.xlu1 %v2480_v50, %s2544_s2 }
0x1381   :  { %v2482_v25 = vpop.eup %2481 }
0x1382   :  { %v1372_v51 = vadd.f32 1.0, %v2482_v25 }
0x1384   :  { %2483 = vrcp.f32 %v1372_v51 }
0x138e   :  { %v2484_v52 = vpop.eup %2483 }
0x138f   :  { %v1376_v26 = vmul.f32 %v2484_v52, %v1314_v5 }
0x13f2   :  { %v1379_v7 = vpop.permute.xlu1 %1378 }
0x13f3   :  { %v1381_v9 = vmul.f32 %v2484_v52, %v1379_v7 }
0x13f5   :  { %1383 = vrot.lane.b32.xlu0 %v1381_v9, %s2545_s17 }
0x1467   :  { %v1384_v43 = vpop.permute.xlu0 %1383 }
0x1468   :  { %v1386_v8 = vadd.f32 %v1384_v43, %v1376_v26 }
0x146a   :  { %2485 = vtanh.f32 %v1386_v8 }
0x1474   :  { %v2486_v10 = vpop.eup %2485 }
0x1475   :  { %1389 = vrot.lane.b32.xlu1 %v2486_v10, %s2544_s2 }
0x14e7   :  { %v1390_v53 = vpop.permute.xlu1 %1389 }
0x14e8   :  { %v1392_v11 = vmul.f32 %v2484_v52, %v1390_v53 }
0x14ea   :  { %v1393_v54 = vpack.c.bf16 %v1392_v11, %v1392_v11 }
0x14ec   :  { %1395 = vrot.lane.b32.xlu0 %v1393_v54, %s2545_s17 }
0x155e   :  { %v1396_v12 = vpop.permute.xlu0 %1395 }
0x155f   :  { %2234 = vmatmul.mubr.msk.bf16.vlgmr.msra.gmra.mrb[32].mxu1 %vm404_vm1, %v1396_v12 }
0x1560   :  { %2246 = vmatpush3.bf16.msra.mxu1 %v2993_v22  ;;  %2249 = vmatprep.mubr.msk.bf16.mxu1 %vm2548_vm4, %v2547_v36 }
0x1561   :  { %2247 = vmatprep.subr.bf16.mxu1 %v2547_v36 }
0x1564   :  { %2248 = vmatpush3.bf16.msra.mxu1 %v3004_v37 }
0x1565   :  { %2261 = vmatprep.subr.bf16.mxu1 %v2547_v36 }
0x1632   :  { %v1434_v14 = vpop.f32.mrb[32].mxu1 }
0x1633   :  { %v1440_v55 = vadd.f32 %v1434_v14, %v3047_v60  ;;  %v2235_v57 = vpop.f32.mrb[33].mxu1 }
0x1634   :  { %v1437_v58 = vpop.f32.mrb[34].mxu1 }
0x1635   :  { %2487 = vtanh.f32 %v1440_v55  ;;  %v2236_v40 = vpop.f32.mrb[35].mxu1  ;;  %v2101_v31 = vmul.f32 -1.442695, %v1440_v55 }
0x1637   :  { %2489 = vpow2.f32 %v2101_v31 }
0x163f   :  { %v2488_v59 = vpop.eup %2487 }
0x1640   :  { %1450 = vrot.lane.b32.xlu1 %v2488_v59, %s2544_s2 }
0x1641   :  { %v2490_v34 = vpop.eup %2489 }
0x1642   :  { %v1444_v19 = vadd.f32 1.0, %v2490_v34 }
0x1644   :  { %2491 = vrcp.f32 %v1444_v19 }
0x164e   :  { %v2492_v61 = vpop.eup %2491 }
0x164f   :  { %v1448_v62 = vmul.f32 %v2492_v61, %v1386_v8 }
0x16b2   :  { %v1451_v1 = vpop.permute.xlu1 %1450 }
0x16b3   :  { %v1453_v56 = vmul.f32 %v2492_v61, %v1451_v1 }
0x16b5   :  { %1455 = vrot.lane.b32.xlu0 %v1453_v56, %s2545_s17 }
0x1727   :  { %v1456_v63 = vpop.permute.xlu0 %1455 }
0x1728   :  { %v1458_v60 = vadd.f32 %v1456_v63, %v1448_v62 }
0x172a   :  { %2493 = vtanh.f32 %v1458_v60 }
0x1734   :  { %v2494_v0 = vpop.eup %2493 }
0x1735   :  { %1461 = vrot.lane.b32.xlu1 %v2494_v0, %s2544_s2 }
0x17a7   :  { %v1462_v33 = vpop.permute.xlu1 %1461 }
0x17a8   :  { %v1464_v2 = vmul.f32 %v2492_v61, %v1462_v33 }
0x17aa   :  { %v1465_v4 = vpack.c.bf16 %v1464_v2, %v1464_v2 }
0x17ac   :  { %1467 = vrot.lane.b32.xlu0 %v1465_v4, %s2545_s17 }
0x181e   :  { %v1468_v16 = vpop.permute.xlu0 %1467 }
0x181f   :  { %2242 = vmatmul.mubr.msk.bf16.vlgmr.msra.gmra.mrb[32].mxu0 %vm404_vm1, %v1468_v16  ;;  %v2371_v16 = vld [vmem:[%s3197_s4 + $0x20] sm:$0xff]  }
0x1820   :  { %2254 = vmatpush3.bf16.msra.mxu0 %v2993_v22  ;;  %2257 = vmatprep.mubr.msk.bf16.mxu0 %vm2548_vm4, %v2547_v36 }
0x1821   :  { %2255 = vmatprep.subr.bf16.mxu0 %v2547_v36 }
0x1824   :  { %2256 = vmatpush3.bf16.msra.mxu0 %v3004_v37 }
0x1825   :  { %2269 = vmatprep.subr.bf16.mxu0 %v2547_v36 }
0x18f2   :  { %v1506_v21 = vpop.f32.mrb[32].mxu0 }
0x18f3   :  { %v1512_v44 = vadd.f32 %v1506_v21, %v3049_v17  ;;  %v2243_v20 = vpop.f32.mrb[33].mxu0 }
0x18f4   :  { %v1509_v23 = vpop.f32.mrb[34].mxu0  ;;  %v2373_v20 = vld [vmem:[%s3197_s4 + $0x30] sm:$0xff]  }
0x18f5   :  { %2495 = vtanh.f32 %v1512_v44  ;;  %v2244_v24 = vpop.f32.mrb[35].mxu0  ;;  %v2103_v28 = vmul.f32 -1.442695, %v1512_v44  ;;  %v2372_v44 = vld [vmem:[%s3197_s4 + $0x28] sm:$0xff]   ;;  %v2374_v23 = vld [vmem:[%s3197_s4 + $0x38] sm:$0xff]  }
0x18f6   :  { %v1832_v24 = vrot.slane %v3037_v48, 4 }
0x18f7   :  { %2497 = vpow2.f32 %v2103_v28 }
0x18ff   :  { %v2496_v27 = vpop.eup %2495 }
0x1900   :  { %1522 = vrot.lane.b32.xlu1 %v2496_v27, %s2544_s2 }
0x1901   :  { %v2498_v30 = vpop.eup %2497 }
0x1902   :  { %v1516_v32 = vadd.f32 1.0, %v2498_v30 }
0x1904   :  { %2499 = vrcp.f32 %v1516_v32 }
0x190e   :  { %v2500_v5 = vpop.eup %2499 }
0x190f   :  { %v1520_v39 = vmul.f32 %v2500_v5, %v1458_v60 }
0x1972   :  { %v1523_v38 = vpop.permute.xlu1 %1522 }
0x1973   :  { %v1525_v29 = vmul.f32 %v2500_v5, %v1523_v38 }
0x1975   :  { %1527 = vrot.lane.b32.xlu0 %v1525_v29, %s2545_s17 }
0x19e7   :  { %v1528_v42 = vpop.permute.xlu0 %1527 }
0x19e8   :  { %v1530_v17 = vadd.f32 %v1528_v42, %v1520_v39 }
0x19ea   :  { %2501 = vtanh.f32 %v1530_v17 }
0x19f4   :  { %v2502_v41 = vpop.eup %2501 }
0x19f5   :  { %1533 = vrot.lane.b32.xlu1 %v2502_v41, %s2544_s2 }
0x1a67   :  { %v1534_v13 = vpop.permute.xlu1 %1533 }
0x1a68   :  { %v1536_v45 = vmul.f32 %v2500_v5, %v1534_v13 }
0x1a6a   :  { %v1537_v47 = vpack.c.bf16 %v1536_v45, %v1536_v45 }
0x1a6c   :  { %1539 = vrot.lane.b32.xlu0 %v1537_v47, %s2545_s17 }
0x1ade   :  { %v1540_v49 = vpop.permute.xlu0 %1539 }
0x1adf   :  { %2250 = vmatmul.mubr.msk.bf16.vlgmr.msra.gmra.mrb[36].mxu1 %vm404_vm1, %v1540_v49 }
0x1ae0   :  { %2262 = vmatpush3.bf16.msra.mxu1 %v2993_v22  ;;  %2265 = vmatprep.mubr.msk.bf16.mxu1 %vm2548_vm4, %v2547_v36 }
0x1ae1   :  { %2263 = vmatprep.subr.bf16.mxu1 %v2547_v36 }
0x1ae4   :  { %2264 = vmatpush3.bf16.msra.mxu1 %v3004_v37 }
0x1ae5   :  { %2277 = vmatprep.subr.bf16.mxu1 %v2547_v36 }
0x1bb2   :  { %v1578_v35 = vpop.f32.mrb[36].mxu1 }
0x1bb3   :  { %v1584_v50 = vadd.f32 %v1578_v35, %v3053_v3  ;;  %v2251_v6 = vpop.f32.mrb[37].mxu1 }
0x1bb4   :  { %v1581_v25 = vpop.f32.mrb[38].mxu1 }
0x1bb5   :  { %2503 = vtanh.f32 %v1584_v50  ;;  %v2252_v51 = vpop.f32.mrb[39].mxu1  ;;  %v2105_v7 = vmul.f32 -1.442695, %v1584_v50  ;;  %v2112_v25 = vld [vmem:[%s3199_s5 + $0x1] ss:$0 sm:$0xff] }
0x1bb7   :  { %2505 = vpow2.f32 %v2105_v7 }
0x1bbf   :  { %v2504_v52 = vpop.eup %2503 }
0x1bc0   :  { %1594 = vrot.lane.b32.xlu1 %v2504_v52, %s2544_s2 }
0x1bc1   :  { %v2506_v9 = vpop.eup %2505 }
0x1bc2   :  { %v1588_v26 = vadd.f32 1.0, %v2506_v9 }
0x1bc4   :  { %2507 = vrcp.f32 %v1588_v26 }
0x1bce   :  { %v2508_v43 = vpop.eup %2507 }
0x1bcf   :  { %v1592_v53 = vmul.f32 %v2508_v43, %v1530_v17 }
0x1c32   :  { %v1595_v8 = vpop.permute.xlu1 %1594 }
0x1c33   :  { %v1597_v10 = vmul.f32 %v2508_v43, %v1595_v8 }
0x1c35   :  { %1599 = vrot.lane.b32.xlu0 %v1597_v10, %s2545_s17 }
0x1ca7   :  { %v1600_v11 = vpop.permute.xlu0 %1599 }
0x1ca8   :  { %v1602_v3 = vadd.f32 %v1600_v11, %v1592_v53 }
0x1caa   :  { %2509 = vtanh.f32 %v1602_v3 }
0x1cb4   :  { %v2510_v54 = vpop.eup %2509 }
0x1cb5   :  { %1605 = vrot.lane.b32.xlu1 %v2510_v54, %s2544_s2 }
0x1d27   :  { %v1606_v12 = vpop.permute.xlu1 %1605 }
0x1d28   :  { %v1608_v14 = vmul.f32 %v2508_v43, %v1606_v12 }
0x1d2a   :  { %v1609_v55 = vpack.c.bf16 %v1608_v14, %v1608_v14 }
0x1d2c   :  { %1611 = vrot.lane.b32.xlu0 %v1609_v55, %s2545_s17 }
0x1d9e   :  { %v1612_v57 = vpop.permute.xlu0 %1611 }
0x1d9f   :  { %2258 = vmatmul.mubr.msk.bf16.vlgmr.msra.gmra.mrb[36].mxu0 %vm404_vm1, %v1612_v57 }
0x1da0   :  { %2270 = vmatpush3.bf16.msra.mxu0 %v2993_v22  ;;  %2273 = vmatprep.mubr.msk.bf16.mxu0 %vm2548_vm4, %v2547_v36 }
0x1da1   :  { %2271 = vmatprep.subr.bf16.mxu0 %v2547_v36 }
0x1da4   :  { %2272 = vmatpush3.bf16.msra.mxu0 %v3004_v37 }
0x1e72   :  { %v1650_v58 = vpop.f32.mrb[36].mxu0 }
0x1e73   :  { %v1656_v40 = vadd.f32 %v1650_v58, %v3057_v18  ;;  %v2259_v59 = vpop.f32.mrb[37].mxu0 }
0x1e74   :  { %v1653_v31 = vpop.f32.mrb[38].mxu0 }
0x1e75   :  { %2511 = vtanh.f32 %v1656_v40  ;;  %v2260_v34 = vpop.f32.mrb[39].mxu0  ;;  %v2107_v61 = vmul.f32 -1.442695, %v1656_v40 }
0x1e77   :  { %2513 = vpow2.f32 %v2107_v61 }
0x1e7f   :  { %v2512_v19 = vpop.eup %2511 }
0x1e80   :  { %1666 = vrot.lane.b32.xlu1 %v2512_v19, %s2544_s2 }
0x1e81   :  { %v2514_v22 = vpop.eup %2513 }
0x1e82   :  { %v1660_v1 = vadd.f32 1.0, %v2514_v22 }
0x1e84   :  { %2515 = vrcp.f32 %v1660_v1 }
0x1e8e   :  { %v2516_v56 = vpop.eup %2515 }
0x1e8f   :  { %v1664_v37 = vmul.f32 %v2516_v56, %v1602_v3 }
0x1ef2   :  { %v1667_v62 = vpop.permute.xlu1 %1666 }
0x1ef3   :  { %v1669_v63 = vmul.f32 %v2516_v56, %v1667_v62 }
0x1ef5   :  { %1671 = vrot.lane.b32.xlu0 %v1669_v63, %s2545_s17 }
0x1f67   :  { %v1672_v60 = vpop.permute.xlu0 %1671 }
0x1f68   :  { %v1674_v18 = vadd.f32 %v1672_v60, %v1664_v37 }
0x1f6a   :  { %2517 = vtanh.f32 %v1674_v18 }
0x1f74   :  { %v2518_v0 = vpop.eup %2517 }
0x1f75   :  { %1677 = vrot.lane.b32.xlu1 %v2518_v0, %s2544_s2  ;;  %v2549_v0 = vmov 0.0|0.0  }
0x1f76   :  { %2308 = vmatprep.subr.bf16.mxu0 %v2549_v0 }
0x1fe7   :  { %v1678_v33 = vpop.permute.xlu1 %1677 }
0x1fe8   :  { %v1680_v2 = vmul.f32 %v2516_v56, %v1678_v33  ;;  %v1933_v33 = vld [vmem:[%s3200_s7] sm:$0xff] }
0x1fea   :  { %v1681_v4 = vpack.c.bf16 %v1680_v2, %v1680_v2  ;;  %v1934_v2 = vld [vmem:[%s3200_s7 + $0x8] sm:$0xff] }
0x1fec   :  { %1683 = vrot.lane.b32.xlu0 %v1681_v4, %s2545_s17  ;;  %v1935_v4 = vld [vmem:[%s3200_s7 + $0x10] sm:$0xff] }
0x205e   :  { %v1684_v21 = vpop.permute.xlu0 %1683 }
0x205f   :  { %2266 = vmatmul.mubr.msk.bf16.vlgmr.msra.gmra.mrb[40].mxu1 %vm404_vm1, %v1684_v21  ;;  %v1936_v21 = vld [vmem:[%s3200_s7 + $0x18] sm:$0xff] }
0x2060   :  { %2278 = vmatpush3.bf16.msra.mxu1 %v2371_v16  ;;  %2285 = vmatprep.mubr.msk.bf16.mxu1 %vm2548_vm4, %v2547_v36  ;;  %v2309_v16 = vpack.c.bf16 %v1934_v2, %v1933_v33 }
0x2061   :  { %2279 = vmatprep.subr.bf16.mxu1 %v2547_v36 }
0x2064   :  { %2280 = vmatpush3.bf16.msra.mxu1 %v2372_v44  ;;  %v2312_v44 = vpack.c.bf16 %v1936_v21, %v1935_v4 }
0x2065   :  { %2281 = vmatprep.subr.bf16.mxu1 %v2547_v36 }
0x2068   :  { %2282 = vmatpush3.bf16.msra.mxu1 %v2373_v20  ;;  %v1937_v20 = vld [vmem:[%s3200_s7 + $0x20] sm:$0xff] }
0x2069   :  { %2283 = vmatprep.subr.bf16.mxu1 %v2547_v36 }
0x206c   :  { %2284 = vmatpush3.bf16.msra.mxu1 %v2374_v23  ;;  %v1938_v23 = vld [vmem:[%s3200_s7 + $0x28] sm:$0xff] }
0x206f   :  { %2286 = vmatmul.mubr.msk.bf16.vlgmr.msra.gmra.mrb[44].mxu1 %vm413_vm2, %v1832_v24  ;;  %v2315_v24 = vpack.c.bf16 %v1938_v23, %v1937_v20 }
0x2132   :  { %v1722_v27 = vpop.f32.mrb[40].mxu1 }
0x2133   :  { %v1728_v28 = vadd.f32 %v1722_v27, %v3051_v46  ;;  %v2267_v30 = vpop.f32.mrb[41].mxu1  ;;  %v1939_v27 = vld [vmem:[%s3200_s7 + $0x30] sm:$0xff] }
0x2134   :  { %v1725_v32 = vpop.f32.mrb[42].mxu1 }
0x2135   :  { %2519 = vtanh.f32 %v1728_v28  ;;  %v2268_v5 = vpop.f32.mrb[43].mxu1  ;;  %v2109_v41 = vmul.f32 -1.442695, %v1728_v28  ;;  %v1940_v28 = vld [vmem:[%s3200_s7 + $0x38] sm:$0xff] }
0x2136   :  { %v2318_v32 = vpack.c.bf16 %v1940_v28, %v1939_v27 }
0x2137   :  { %2521 = vpow2.f32 %v2109_v41 }
0x213f   :  { %v2520_v38 = vpop.eup %2519 }
0x2140   :  { %1738 = vrot.lane.b32.xlu1 %v2520_v38, %s2544_s2 }
0x2141   :  { %v2522_v13 = vpop.eup %2521 }
0x2142   :  { %v1894_v29 = vpop.f32.mrb[44].mxu1  ;;  %v1732_v48 = vadd.f32 1.0, %v2522_v13 }
0x2143   :  { %v2287_v39 = vpop.f32.mrb[45].mxu1  ;;  %v1895_v51 = vadd.f32 %v2112_v25, %v1894_v29 }
0x2144   :  { %v1897_v42 = vpop.f32.mrb[46].mxu1  ;;  %2523 = vrcp.f32 %v1732_v48 }
0x2145   :  { %v2288_v17 = vpop.f32.mrb[47].mxu1  ;;  %v2118_v43 = vmul.f32 -1.442695, %v1895_v51 }
0x2146   :  { %v2119_v17 = vld [vmem:[%s3201_s8] ss:$0 sm:$0xff] }
0x214e   :  { %v2524_v45 = vpop.eup %2523 }
0x214f   :  { %v1736_v46 = vmul.f32 %v2524_v45, %v1674_v18 }
0x21b2   :  { %v1739_v47 = vpop.permute.xlu1 %1738 }
0x21b3   :  { %v1741_v49 = vmul.f32 %v2524_v45, %v1739_v47 }
0x21b5   :  { %1743 = vrot.lane.b32.xlu0 %v1741_v49, %s2545_s17 }
0x2227   :  { %v1744_v35 = vpop.permute.xlu0 %1743 }
0x2228   :  { %v1746_v50 = vadd.f32 %v1744_v35, %v1736_v46 }
0x222a   :  { %2525 = vtanh.f32 %v1746_v50 }
0x222b   :  { %2527 = vtanh.f32 %v1895_v51 }
0x222c   :  { %2529 = vpow2.f32 %v2118_v43 }
0x2234   :  { %v2526_v6 = vpop.eup %2525 }
0x2235   :  { %1749 = vrot.lane.b32.xlu1 %v2526_v6, %s2544_s2  ;;  %v2528_v26 = vpop.eup %2527 }
0x2236   :  { %v2530_v8 = vpop.eup %2529 }
0x2237   :  { %v1903_v10 = vadd.f32 1.0, %v2530_v8 }
0x2239   :  { %2531 = vrcp.f32 %v1903_v10 }
0x2243   :  { %v2532_v11 = vpop.eup %2531 }
0x2244   :  { %v1907_v12 = vmul.f32 0.0, %v2532_v11 }
0x22a7   :  { %v1750_v52 = vpop.permute.xlu1 %1749 }
0x22a8   :  { %v1752_v7 = vmul.f32 %v2524_v45, %v1750_v52 }
0x22aa   :  { %v1753_v9 = vpack.c.bf16 %v1752_v7, %v1752_v7 }
0x22ac   :  { %1755 = vrot.lane.b32.xlu0 %v1753_v9, %s2545_s17 }
0x22b0   :  { %1909 = vrot.lane.b32.xlu0 %v2528_v26, %s2544_s2 }
0x231e   :  { %v1756_v53 = vpop.permute.xlu0 %1755 }
0x231f   :  { %2274 = vmatmul.mubr.msk.bf16.vlgmr.msra.gmra.mrb[40].mxu0 %vm404_vm1, %v1756_v53 }
0x2320   :  { %2305 = vmatprep.mubr.msk.f32.mxu0 %vm2548_vm4, %v2547_v36  ;;  %2310 = vmatpush3.bf16.msra.mxu0 %v2309_v16 }
0x2321   :  { %2311 = vmatprep.subr.bf16.mxu0 %v2549_v0 }
0x2322   :  { %v1910_v3 = vpop.permute.xlu0 %1909 }
0x2323   :  { %v1912_v54 = vmul.f32 %v2532_v11, %v1910_v3 }
0x2324   :  { %2313 = vmatpush3.bf16.msra.mxu0 %v2312_v44 }
0x2325   :  { %1914 = vrot.lane.b32.xlu0 %v1912_v54, %s2545_s17  ;;  %2314 = vmatprep.subr.bf16.mxu0 %v2549_v0 }
0x2328   :  { %2316 = vmatpush3.bf16.msra.mxu0 %v2315_v24 }
0x2329   :  { %2317 = vmatprep.subr.bf16.mxu0 %v2549_v0 }
0x232c   :  { %2319 = vmatpush3.bf16.msra.mxu0 %v2318_v32 }
0x2397   :  { %v1915_v14 = vpop.permute.xlu0 %1914 }
0x2398   :  { %v1917_v55 = vadd.f32 %v1915_v14, %v1907_v12 }
0x239a   :  { %2533 = vtanh.f32 %v1917_v55 }
0x23a4   :  { %v2534_v57 = vpop.eup %2533 }
0x23a5   :  { %1920 = vrot.lane.b32.xlu0 %v2534_v57, %s2544_s2 }
0x23f2   :  { %v1794_v58 = vpop.f32.mrb[40].mxu0 }
0x23f3   :  { %v1800_v40 = vadd.f32 %v1794_v58, %v3055_v15  ;;  %v2275_v59 = vpop.f32.mrb[41].mxu0 }
0x23f4   :  { %v1797_v31 = vpop.f32.mrb[42].mxu0 }
0x23f5   :  { %2535 = vtanh.f32 %v1800_v40  ;;  %v2276_v34 = vpop.f32.mrb[43].mxu0  ;;  %v2111_v22 = vmul.f32 -1.442695, %v1800_v40 }
0x23f7   :  { %2537 = vpow2.f32 %v2111_v22 }
0x23ff   :  { %v2536_v36 = vpop.eup %2535 }
0x2400   :  { %1810 = vrot.lane.b32.xlu1 %v2536_v36, %s2544_s2 }
0x2401   :  { %v2538_v1 = vpop.eup %2537 }
0x2402   :  { %v1804_v56 = vadd.f32 1.0, %v2538_v1 }
0x2404   :  { %2539 = vrcp.f32 %v1804_v56 }
0x240e   :  { %v2540_v62 = vpop.eup %2539 }
0x240f   :  { %v1808_v15 = vmul.f32 %v2540_v62, %v1746_v50 }
0x2417   :  { %v1921_v19 = vpop.permute.xlu0 %1920 }
0x2418   :  { %v1923_v61 = vmul.f32 %v2532_v11, %v1921_v19 }
0x241a   :  { %1929 = vrot.lane.b32.xlu0 %v1923_v61, %s2544_s2 }
0x2472   :  { %v1811_v63 = vpop.permute.xlu1 %1810 }
0x2473   :  { %v1813_v37 = vmul.f32 %v2540_v62, %v1811_v63 }
0x2475   :  { %1815 = vrot.lane.b32.xlu1 %v1813_v37, %s2545_s17 }
0x248c   :  { %v1930_v29 = vpop.permute.xlu0 %1929 }
0x24e7   :  { %v1816_v60 = vpop.permute.xlu1 %1815 }
0x24e8   :  { %v1818_v18 = vadd.f32 %v1816_v60, %v1808_v15 }
0x24ea   :  { %2541 = vtanh.f32 %v1818_v18 }
0x24f4   :  { %v2542_v30 = vpop.eup %2541 }
0x24f5   :  { %1821 = vrot.lane.b32.xlu1 %v2542_v30, %s2544_s2 }
0x2567   :  { %v1822_v5 = vpop.permute.xlu1 %1821 }
0x2568   :  { %v1824_v38 = vmul.f32 %v2540_v62, %v1822_v5 }
0x256a   :  { %1925 = vrot.lane.b32.xlu1 %v1824_v38, %s2545_s17 }
0x25dc   :  { %v1926_v39 = vpop.permute.xlu1 %1925 }
0x25dd   :  { %v1932_v42 = vsel %vm404_vm1, %v1926_v39, %v1930_v29 }
0x25de   :  { %2306 = vmatmul.mubr.msk.f32.vlgmr.msra.gmra.mrb[44].mxu0 %vm413_vm2, %v1932_v42 }
0x26b1   :  { %v2017_v41 = vpop.f32.mrb[44].mxu0 }
0x26b2   :  { %v2018_v13 = vadd.f32 %v2119_v17, %v2017_v41  ;;  %v2307_v48 = vpop.f32.mrb[45].mxu0 }
0x26b4   :  { %2022 = vst.msk [vmem:[%s3202_s9] sm:$0xff] %vm2021_vm5, %v2018_v13 }

</bundles_post_ra>
